<compile_context>
chip_gen: v7x
topology: tpu7x:2x2x1
jax: 0.10.0
libtpu: 0.0.40
codegen_flags: <defaults>
</compile_context>

<pallas_src>
import functools

import jax
import jax.numpy as jnp
from jax.experimental import pallas as pl
from jax.experimental.pallas import tpu as pltpu


# ---------------------------------------------------------------------------
# Kernel
# ---------------------------------------------------------------------------
def _cnn_kernel(window, variables, hw, bpb,
                x_ref, w1_ref, b1_ref, w2_ref, b2_ref, w3_ref, b3_ref,
                wl1_ref, bl1_ref, wo_ref, bo_ref, whw_ref, bhw_ref,
                out_ref, a2_scr, a3_scr):
    """One grid step = `bpb` samples, flattened along the row (sublane) axis."""
    N = bpb * window           # flattened x rows in this block
    L1 = N - 2                 # conv1 rows (per-sample tail rows are junk, unused)
    L2 = N - 4                 # conv2 rows
    Rp = N // 2 - 2            # pooled rows
    L3 = N // 2 - 4            # conv3 rows
    half = window // 2         # per-sample row stride in pooled / conv3 space
    bf16 = jnp.bfloat16

    # ---- conv1 + relu: 3 taps fused into a single K = 3*V matmul ----------
    xc = jnp.concatenate(
        [x_ref[0:L1, :], x_ref[1:L1 + 1, :], x_ref[2:L1 + 2, :]],
        axis=-1).astype(bf16)                                    # (L1, 3V)
    a1 = jnp.dot(xc, w1_ref[...], preferred_element_type=jnp.float32)
    a1 = jnp.maximum(a1 + b1_ref[...], 0.0)                      # (L1, 32) f32

    # ---- conv2 + relu: fused K = 96 matmul ---------------------------------
    c2 = jnp.concatenate(
        [a1[0:L2, :], a1[1:L2 + 1, :], a1[2:L2 + 2, :]],
        axis=-1).astype(bf16)                                    # (L2, 96)
    a2 = jnp.dot(c2, w2_ref[...], preferred_element_type=jnp.float32)
    a2 = jnp.maximum(a2 + b2_ref[...], 0.0)                      # (L2, 32)

    # ---- maxpool1 (kernel=2, stride=2): scratch + sublane-strided reads ----
    a2_scr[...] = a2
    p = jnp.maximum(a2_scr[pl.ds(0, Rp, 2), :],
                    a2_scr[pl.ds(1, Rp, 2), :])                  # (Rp, 32)

    # ---- conv3 + relu: fused K = 96 matmul ---------------------------------
    c3 = jnp.concatenate(
        [p[0:L3, :], p[1:L3 + 1, :], p[2:L3 + 2, :]],
        axis=-1).astype(bf16)                                    # (L3, 96)
    a3 = jnp.dot(c3, w3_ref[...], preferred_element_type=jnp.float32)
    a3_scr[...] = jnp.maximum(a3 + b3_ref[...], 0.0)             # (L3, 16)

    # ---- dropout: identity at inference. -----------------------------------
    # linear1 over PyTorch's channel-major flatten (f = c*12 + t).  Weights
    # were pre-permuted to (12, 16, 100); for each tap t the rows of all bpb
    # samples are gathered with one strided read -> (bpb, 16) and contracted
    # in one matmul.  The 12 partial results are combined with a pairwise
    # tree sum so MXU pushes/pops can pipeline.
    parts = []
    for t in range(12):
        rows_t = a3_scr[pl.ds(t, bpb, half), :].astype(bf16)     # (bpb, 16)
        parts.append(jnp.dot(rows_t, wl1_ref[t],
                             preferred_element_type=jnp.float32))
    while len(parts) > 1:
        nxt = [parts[i] + parts[i + 1] for i in range(0, len(parts) - 1, 2)]
        if len(parts) % 2:
            nxt.append(parts[-1])
        parts = nxt
    h = parts[0] + bl1_ref[...]                                  # (bpb, 100)

    # ---- dropout: identity.  Output linear: (bpb,100) @ (100,V) ------------
    o = jnp.dot(h.astype(bf16), wo_ref[...],
                preferred_element_type=jnp.float32) + bo_ref[...]

    # ---- highway:  z[b, v] = sum_j x[b, window-hw+j, v] * whw[j] + bhw ------
    if hw > 0:
        z = jnp.zeros((bpb, variables), jnp.float32)
        for j in range(hw):
            rows = x_ref[pl.ds(window - hw + j, bpb, window), :]  # (bpb, V)
            z = z + rows * whw_ref[j]                             # SMEM scalar
        o = o + z + bhw_ref[0]

    # ---- output activation (args.output_fun == 'sigmoid') ------------------
    out_ref[...] = jax.nn.sigmoid(o)[None]


# ---------------------------------------------------------------------------
# Device introspection helpers
# ---------------------------------------------------------------------------
def _tensorcores_per_chip():
    try:
        info = pltpu.get_tpu_info()
        for name in ("num_cores", "core_count", "cores_per_chip",
                     "num_tensorcores", "tensorcore_count"):
            val = getattr(info, name, None)
            if isinstance(val, int) and val > 0:
                return val
    except Exception:
        pass
    try:
        kind = jax.devices()[0].device_kind.lower()
        if "v7" in kind or "7x" in kind:
            return 2
    except Exception:
        pass
    return 1


def _vmem_capacity_bytes():
    try:
        cap = getattr(pltpu.get_tpu_info(), "vmem_capacity_bytes", None)
        if isinstance(cap, int) and cap > 0:
            return cap
    except Exception:
        pass
    return 64 << 20   # conservative (v7x)


def _choose_num_blocks(batch, ncores, cap):
    """Smallest divisor of `batch` that uses all TensorCores and keeps the
    per-block sample count <= cap (VMEM bound)."""
    target = max(ncores, -(-batch // cap))
    for d in range(1, batch + 1):
        if batch % d == 0 and d >= target:
            return d
    return batch


# ---------------------------------------------------------------------------
# Wrapper
# ---------------------------------------------------------------------------
def cnn_forward(x, params, hw):
    """x: (B, window, variables) float32, channels-last."""
    B, window, V = x.shape
    assert window == 32, "linear1 expects 16*12 features -> window must be 32"
    (w1, b1, w2, b2, w3, b3, wl1, bl1, wo, bo, whw, bhw) = params

    ncores = _tensorcores_per_chip()
    cap = 128 if ncores >= 2 else 256          # samples per block
    nblk = _choose_num_blocks(B, ncores, cap)
    bpb = B // nblk
    N = bpb * window

    x2 = x.reshape(nblk * N, V)                # host-side re-layout (free)

    kernel = functools.partial(_cnn_kernel, window, V, hw, bpb)

    def _vmem_full(arr):
        nd = arr.ndim
        return pl.BlockSpec(arr.shape, lambda g, nd=nd: (0,) * nd)

    def _smem_full(arr):
        nd = arr.ndim
        return pl.BlockSpec(arr.shape, lambda g, nd=nd: (0,) * nd,
                            memory_space=pltpu.MemorySpace.SMEM)

    in_specs = [
        pl.BlockSpec((N, V), lambda g: (g, 0)),          # x block (bpb samples)
        _vmem_full(w1), _vmem_full(b1),
        _vmem_full(w2), _vmem_full(b2),
        _vmem_full(w3), _vmem_full(b3),
        _vmem_full(wl1), _vmem_full(bl1),
        _vmem_full(wo), _vmem_full(bo),
        _smem_full(whw), _smem_full(bhw),
    ]

    # Explicit VMEM budget with headroom (re-derived per chip generation).
    wbytes = sum(int(a.size) * jnp.dtype(a.dtype).itemsize for a in params)
    est = (2 * N * V * 4            # x block, double buffered
           + 3 * N * 32 * 4         # a1 / a2 / a2_scr (f32)
           + 2 * N * 96 * 2         # bf16 im2col slabs
           + 2 * (N // 2) * 16 * 4  # a3 / a3_scr
           + 8 * bpb * 100 * 4      # linear1 partials
           + 4 * bpb * V * 4        # output block, double buffered
           + wbytes)
    vmem_limit = int(min(0.9 * _vmem_capacity_bytes(),
                         max(32 << 20, 4 * est)))

    out = pl.pallas_call(
        kernel,
        out_shape=jax.ShapeDtypeStruct((nblk, bpb, V), jnp.float32),
        grid=(nblk,),
        in_specs=in_specs,
        out_specs=pl.BlockSpec((1, bpb, V), lambda g: (g, 0, 0)),
        scratch_shapes=[pltpu.VMEM((N - 4, 32), jnp.float32),
                        pltpu.VMEM((N // 2 - 4, 16), jnp.float32)],
        compiler_params=pltpu.CompilerParams(
            dimension_semantics=("parallel",),
            vmem_limit_bytes=vmem_limit),
    )(x2, w1, b1, w2, b2, w3, b3, wl1, bl1, wo, bo, whw, bhw)
    return out.reshape(B, V)


# ---------------------------------------------------------------------------
# Deterministic parameter construction (PyTorch-convention shapes) + re-layout
# ---------------------------------------------------------------------------
def init_params_pytorch_convention(key, variables, hw):
    keys = jax.random.split(key, 12)

    def u(k, shape, fan_in):
        bound = 1.0 / float(fan_in) ** 0.5
        return jax.random.uniform(k, shape, jnp.float32, -bound, bound)

    conv1_w = u(keys[0], (32, variables, 3), variables * 3)
    conv1_b = u(keys[1], (32,), variables * 3)
    conv2_w = u(keys[2], (32, 32, 3), 32 * 3)
    conv2_b = u(keys[3], (32,), 32 * 3)
    conv3_w = u(keys[4], (16, 32, 3), 32 * 3)
    conv3_b = u(keys[5], (16,), 32 * 3)
    lin1_w = u(keys[6], (100, 16 * 12), 16 * 12)
    lin1_b = u(keys[7], (100,), 16 * 12)
    out_w = u(keys[8], (variables, 100), 100)
    out_b = u(keys[9], (variables,), 100)
    hw_w = u(keys[10], (1, max(hw, 1)), max(hw, 1))
    hw_b = u(keys[11], (1,), max(hw, 1))
    return (conv1_w, conv1_b, conv2_w, conv2_b, conv3_w, conv3_b,
            lin1_w, lin1_b, out_w, out_b, hw_w, hw_b)


def prep_params_for_kernel(pt):
    (c1w, c1b, c2w, c2b, c3w, c3b, l1w, l1b, ow, ob, hww, hwb) = pt
    V = c1w.shape[1]
    bf16 = jnp.bfloat16
    # Fused im2col weights: LHS lane index is tap*Cin + cin, so the fused
    # weight row (tap*Cin + cin) must hold conv_w[cout, cin, tap].
    w1 = jnp.transpose(c1w, (2, 1, 0)).reshape(3 * V, 32).astype(bf16)
    w2 = jnp.transpose(c2w, (2, 1, 0)).reshape(3 * 32, 32).astype(bf16)
    w3 = jnp.transpose(c3w, (2, 1, 0)).reshape(3 * 32, 16).astype(bf16)
    # PyTorch flatten index f = c*12 + t  ->  wl1[t, c, j] = W1[j, c*12 + t]
    wl1 = jnp.transpose(l1w.reshape(100, 16, 12), (2, 1, 0)).astype(bf16)
    wo = ow.T.astype(bf16)                                     # (100, V)
    whw = hww.reshape(-1).astype(jnp.float32)                  # (hw,)
    if whw.size == 0:
        whw = jnp.zeros((1,), jnp.float32)
    bhw = hwb.reshape(-1).astype(jnp.float32)                  # (1,)
    return (w1, c1b[None, :], w2, c2b[None, :], w3, c3b[None, :],
            wl1, l1b[None, :], wo, ob[None, :], whw, bhw)


# ---------------------------------------------------------------------------
# Pure-JAX reference (NCW, matching PyTorch semantics) for verification
# ---------------------------------------------------------------------------
def reference_forward(x, pt, hw):
    c1w, c1b, c2w, c2b, c3w, c3b, l1w, l1b, ow, ob, hww, hwb = pt
    B, window, V = x.shape
    c = jnp.transpose(x, (0, 2, 1))                          # (B, V, window)

    def conv1d(inp, w, bb):
        out = jax.lax.conv_general_dilated(
            inp, w, (1,), 'VALID', dimension_numbers=('NCH', 'OIH', 'NCH'))
        return out + bb[None, :, None]

    c = jax.nn.relu(conv1d(c, c1w, c1b))
    c = jax.nn.relu(conv1d(c, c2w, c2b))
    Bc, Cc, Lc = c.shape
    c = jnp.max(c[:, :, :Lc // 2 * 2].reshape(Bc, Cc, Lc // 2, 2), axis=-1)
    c = jax.nn.relu(conv1d(c, c3w, c3b))
    c = c.reshape(B, -1)                                     # channel-major flatten
    c = c @ l1w.T + l1b
    out = c @ ow.T + ob
    if hw > 0:
        z = x[:, -hw:, :]                                    # (B, hw, V)
        z = jnp.transpose(z, (0, 2, 1)).reshape(-1, hw)
        z = z @ hww.T + hwb
        out = out + z.reshape(-1, V)
    return jax.nn.sigmoid(out)


if __name__ == "__main__":
    # window must be 32 so that the conv/pool stack yields 16*12 features.
    B, window, V, hw = 2, 32, 4, 4

    key = jax.random.PRNGKey(0)
    kx, kp = jax.random.split(key)
    x = jax.random.normal(kx, (B, window, V), jnp.float32)

    pt_params = init_params_pytorch_convention(kp, V, hw)
    params = prep_params_for_kernel(pt_params)

    out = cnn_forward(x, params, hw)
    out = jax.block_until_ready(out)

    ref = reference_forward(x, pt_params, hw)
    assert out.shape == (B, V)
    # Kernel matmuls use bf16 operands with f32 accumulation, so the result is
    # close to (but not bit-equal with) the f32 XLA reference.
    err = float(jnp.max(jnp.abs(out - ref)))
    if not jnp.allclose(out, ref, atol=3e-2, rtol=3e-2):
        raise AssertionError(f"mismatch vs reference, max abs err = {err}")

    # TODO(synk): training-mode dropout (stochastic masking) not implemented;
    # forward here matches PyTorch eval() semantics where Dropout is identity.
    print("KERNEL_OK")
</pallas_src>

<mosaic_0001>
module attributes {stable_mosaic.version = 11 : i64} {
  func.func @_cnn_kernel(%arg0: i32, %arg1: memref<64x4xf32, #tpu.memory_space<vmem>>, %arg2: memref<12x32xbf16, #tpu.memory_space<vmem>>, %arg3: memref<1x32xf32, #tpu.memory_space<vmem>>, %arg4: memref<96x32xbf16, #tpu.memory_space<vmem>>, %arg5: memref<1x32xf32, #tpu.memory_space<vmem>>, %arg6: memref<96x16xbf16, #tpu.memory_space<vmem>>, %arg7: memref<1x16xf32, #tpu.memory_space<vmem>>, %arg8: memref<12x16x100xbf16, #tpu.memory_space<vmem>>, %arg9: memref<1x100xf32, #tpu.memory_space<vmem>>, %arg10: memref<100x4xbf16, #tpu.memory_space<vmem>>, %arg11: memref<1x4xf32, #tpu.memory_space<vmem>>, %arg12: memref<4xf32, #tpu.memory_space<smem>>, %arg13: memref<1xf32, #tpu.memory_space<smem>>, %arg14: memref<1x2x4xf32, #tpu.memory_space<vmem>>, %arg15: memref<60x32xf32, #tpu.memory_space<vmem>>, %arg16: memref<28x16xf32, #tpu.memory_space<vmem>>) attributes {dimension_semantics = [#tpu.dimension_semantics<parallel>], iteration_bounds = array<i64: 1>, scalar_prefetch = 0 : i64, scratch_operands = 2 : i64, tpu.core_type = #tpu.core_type<tc>, window_params = [{transform_indices = @transform_0, window_bounds = array<i64: 64, 4>}, {pipeline_mode = #tpu.pipeline_mode<synchronous>, transform_indices = @transform_1, window_bounds = array<i64: 12, 32>}, {pipeline_mode = #tpu.pipeline_mode<synchronous>, transform_indices = @transform_2, window_bounds = array<i64: 1, 32>}, {pipeline_mode = #tpu.pipeline_mode<synchronous>, transform_indices = @transform_3, window_bounds = array<i64: 96, 32>}, {pipeline_mode = #tpu.pipeline_mode<synchronous>, transform_indices = @transform_4, window_bounds = array<i64: 1, 32>}, {pipeline_mode = #tpu.pipeline_mode<synchronous>, transform_indices = @transform_5, window_bounds = array<i64: 96, 16>}, {pipeline_mode = #tpu.pipeline_mode<synchronous>, transform_indices = @transform_6, window_bounds = array<i64: 1, 16>}, {pipeline_mode = #tpu.pipeline_mode<synchronous>, transform_indices = @transform_7, window_bounds = array<i64: 12, 16, 100>}, {pipeline_mode = #tpu.pipeline_mode<synchronous>, transform_indices = @transform_8, window_bounds = array<i64: 1, 100>}, {pipeline_mode = #tpu.pipeline_mode<synchronous>, transform_indices = @transform_9, window_bounds = array<i64: 100, 4>}, {pipeline_mode = #tpu.pipeline_mode<synchronous>, transform_indices = @transform_10, window_bounds = array<i64: 1, 4>}, {transform_indices = @transform_11, window_bounds = array<i64: 4>}, {transform_indices = @transform_12, window_bounds = array<i64: 1>}, {transform_indices = @transform_13, window_bounds = array<i64: 1, 2, 4>}]} {
    %c0 = arith.constant 0 : index
    %c0_0 = arith.constant 0 : index
    %0 = vector.load %arg1[%c0, %c0_0] : memref<64x4xf32, #tpu.memory_space<vmem>>, vector<62x4xf32>
    %c1 = arith.constant 1 : index
    %c0_1 = arith.constant 0 : index
    %1 = vector.load %arg1[%c1, %c0_1] : memref<64x4xf32, #tpu.memory_space<vmem>>, vector<62x4xf32>
    %c2 = arith.constant 2 : index
    %c0_2 = arith.constant 0 : index
    %2 = vector.load %arg1[%c2, %c0_2] : memref<64x4xf32, #tpu.memory_space<vmem>>, vector<62x4xf32>
    %3 = tpu.concatenate %0, %1, %2 in 1 : vector<62x4xf32>, vector<62x4xf32>, vector<62x4xf32> -> vector<62x12xf32>
    %4 = arith.truncf %3 : vector<62x12xf32> to vector<62x12xbf16>
    %c0_3 = arith.constant 0 : index
    %c0_4 = arith.constant 0 : index
    %5 = vector.load %arg2[%c0_3, %c0_4] : memref<12x32xbf16, #tpu.memory_space<vmem>>, vector<12x32xbf16>
    %cst = arith.constant dense<0.000000e+00> : vector<62x32xf32>
    %6 = tpu.matmul %4, %5, %cst {dimension_numbers = #tpu.dot_dimension_numbers<[1], [0], [0], [1], [0, 0, 1, 1], [], []>} : vector<62x12xbf16>, vector<12x32xbf16>, vector<62x32xf32> -> vector<62x32xf32>
    %c0_5 = arith.constant 0 : index
    %c0_6 = arith.constant 0 : index
    %7 = vector.load %arg3[%c0_5, %c0_6] : memref<1x32xf32, #tpu.memory_space<vmem>>, vector<1x32xf32>
    %8 = vector.broadcast %7 : vector<1x32xf32> to vector<62x32xf32>
    %9 = arith.addf %6, %8 : vector<62x32xf32>
    %cst_7 = arith.constant 0.000000e+00 : f32
    %10 = vector.broadcast %cst_7 : f32 to vector<62x32xf32>
    %11 = arith.maximumf %9, %10 : vector<62x32xf32>
    %12 = vector.extract_strided_slice %11 {offsets = [0, 0], sizes = [60, 32], strides = [1, 1]} : vector<62x32xf32> to vector<60x32xf32>
    %13 = vector.extract_strided_slice %11 {offsets = [1, 0], sizes = [60, 32], strides = [1, 1]} : vector<62x32xf32> to vector<60x32xf32>
    %14 = vector.extract_strided_slice %11 {offsets = [2, 0], sizes = [60, 32], strides = [1, 1]} : vector<62x32xf32> to vector<60x32xf32>
    %15 = tpu.concatenate %12, %13, %14 in 1 : vector<60x32xf32>, vector<60x32xf32>, vector<60x32xf32> -> vector<60x96xf32>
    %16 = arith.truncf %15 : vector<60x96xf32> to vector<60x96xbf16>
    %c0_8 = arith.constant 0 : index
    %c0_9 = arith.constant 0 : index
    %17 = vector.load %arg4[%c0_8, %c0_9] : memref<96x32xbf16, #tpu.memory_space<vmem>>, vector<96x32xbf16>
    %cst_10 = arith.constant dense<0.000000e+00> : vector<60x32xf32>
    %18 = tpu.matmul %16, %17, %cst_10 {dimension_numbers = #tpu.dot_dimension_numbers<[1], [0], [0], [1], [0, 0, 1, 1], [], []>} : vector<60x96xbf16>, vector<96x32xbf16>, vector<60x32xf32> -> vector<60x32xf32>
    %c0_11 = arith.constant 0 : index
    %c0_12 = arith.constant 0 : index
    %19 = vector.load %arg5[%c0_11, %c0_12] : memref<1x32xf32, #tpu.memory_space<vmem>>, vector<1x32xf32>
    %20 = vector.broadcast %19 : vector<1x32xf32> to vector<60x32xf32>
    %21 = arith.addf %18, %20 : vector<60x32xf32>
    %cst_13 = arith.constant 0.000000e+00 : f32
    %22 = vector.broadcast %cst_13 : f32 to vector<60x32xf32>
    %23 = arith.maximumf %21, %22 : vector<60x32xf32>
    %c0_14 = arith.constant 0 : index
    %c0_15 = arith.constant 0 : index
    %24 = vector.load %arg15[%c0_14, %c0_15] : memref<60x32xf32, #tpu.memory_space<vmem>>, vector<60x32xf32>
    tpu.vector_store %arg15[%c0_14, %c0_15], %23 {strides = array<i32>} : memref<60x32xf32, #tpu.memory_space<vmem>>, vector<60x32xf32>,
    %c0_16 = arith.constant 0 : index
    %c0_17 = arith.constant 0 : index
    %25 = tpu.strided_load %arg15[%c0_16, %c0_17] {strides = array<i32: 2, 1>} : memref<60x32xf32, #tpu.memory_space<vmem>>, vector<30x32xf32>
    %c1_18 = arith.constant 1 : index
    %c0_19 = arith.constant 0 : index
    %26 = tpu.strided_load %arg15[%c1_18, %c0_19] {strides = array<i32: 2, 1>} : memref<60x32xf32, #tpu.memory_space<vmem>>, vector<30x32xf32>
    %27 = arith.maximumf %25, %26 : vector<30x32xf32>
    %28 = vector.extract_strided_slice %27 {offsets = [0, 0], sizes = [28, 32], strides = [1, 1]} : vector<30x32xf32> to vector<28x32xf32>
    %29 = vector.extract_strided_slice %27 {offsets = [1, 0], sizes = [28, 32], strides = [1, 1]} : vector<30x32xf32> to vector<28x32xf32>
    %30 = vector.extract_strided_slice %27 {offsets = [2, 0], sizes = [28, 32], strides = [1, 1]} : vector<30x32xf32> to vector<28x32xf32>
    %31 = tpu.concatenate %28, %29, %30 in 1 : vector<28x32xf32>, vector<28x32xf32>, vector<28x32xf32> -> vector<28x96xf32>
    %32 = arith.truncf %31 : vector<28x96xf32> to vector<28x96xbf16>
    %c0_20 = arith.constant 0 : index
    %c0_21 = arith.constant 0 : index
    %33 = vector.load %arg6[%c0_20, %c0_21] : memref<96x16xbf16, #tpu.memory_space<vmem>>, vector<96x16xbf16>
    %cst_22 = arith.constant dense<0.000000e+00> : vector<28x16xf32>
    %34 = tpu.matmul %32, %33, %cst_22 {dimension_numbers = #tpu.dot_dimension_numbers<[1], [0], [0], [1], [0, 0, 1, 1], [], []>} : vector<28x96xbf16>, vector<96x16xbf16>, vector<28x16xf32> -> vector<28x16xf32>
    %c0_23 = arith.constant 0 : index
    %c0_24 = arith.constant 0 : index
    %35 = vector.load %arg7[%c0_23, %c0_24] : memref<1x16xf32, #tpu.memory_space<vmem>>, vector<1x16xf32>
    %36 = vector.broadcast %35 : vector<1x16xf32> to vector<28x16xf32>
    %37 = arith.addf %34, %36 : vector<28x16xf32>
    %cst_25 = arith.constant 0.000000e+00 : f32
    %38 = vector.broadcast %cst_25 : f32 to vector<28x16xf32>
    %39 = arith.maximumf %37, %38 : vector<28x16xf32>
    %c0_26 = arith.constant 0 : index
    %c0_27 = arith.constant 0 : index
    %40 = vector.load %arg16[%c0_26, %c0_27] : memref<28x16xf32, #tpu.memory_space<vmem>>, vector<28x16xf32>
    tpu.vector_store %arg16[%c0_26, %c0_27], %39 {strides = array<i32>} : memref<28x16xf32, #tpu.memory_space<vmem>>, vector<28x16xf32>,
    %c0_28 = arith.constant 0 : index
    %c0_29 = arith.constant 0 : index
    %41 = tpu.strided_load %arg16[%c0_28, %c0_29] {strides = array<i32: 16, 1>} : memref<28x16xf32, #tpu.memory_space<vmem>>, vector<2x16xf32>
    %42 = arith.truncf %41 : vector<2x16xf32> to vector<2x16xbf16>
    %c0_30 = arith.constant 0 : index
    %c0_31 = arith.constant 0 : index
    %c0_32 = arith.constant 0 : index
    %43 = vector.load %arg8[%c0_30, %c0_31, %c0_32] : memref<12x16x100xbf16, #tpu.memory_space<vmem>>, vector<1x16x100xbf16>
    %44 = vector.shape_cast %43 : vector<1x16x100xbf16> to vector<16x100xbf16>
    %cst_33 = arith.constant dense<0.000000e+00> : vector<2x100xf32>
    %45 = tpu.matmul %42, %44, %cst_33 {dimension_numbers = #tpu.dot_dimension_numbers<[1], [0], [0], [1], [0, 0, 1, 1], [], []>} : vector<2x16xbf16>, vector<16x100xbf16>, vector<2x100xf32> -> vector<2x100xf32>
    %c1_34 = arith.constant 1 : index
    %c0_35 = arith.constant 0 : index
    %46 = tpu.strided_load %arg16[%c1_34, %c0_35] {strides = array<i32: 16, 1>} : memref<28x16xf32, #tpu.memory_space<vmem>>, vector<2x16xf32>
    %47 = arith.truncf %46 : vector<2x16xf32> to vector<2x16xbf16>
    %c1_36 = arith.constant 1 : index
    %c0_37 = arith.constant 0 : index
    %c0_38 = arith.constant 0 : index
    %48 = vector.load %arg8[%c1_36, %c0_37, %c0_38] : memref<12x16x100xbf16, #tpu.memory_space<vmem>>, vector<1x16x100xbf16>
    %49 = vector.shape_cast %48 : vector<1x16x100xbf16> to vector<16x100xbf16>
    %cst_39 = arith.constant dense<0.000000e+00> : vector<2x100xf32>
    %50 = tpu.matmul %47, %49, %cst_39 {dimension_numbers = #tpu.dot_dimension_numbers<[1], [0], [0], [1], [0, 0, 1, 1], [], []>} : vector<2x16xbf16>, vector<16x100xbf16>, vector<2x100xf32> -> vector<2x100xf32>
    %c2_40 = arith.constant 2 : index
    %c0_41 = arith.constant 0 : index
    %51 = tpu.strided_load %arg16[%c2_40, %c0_41] {strides = array<i32: 16, 1>} : memref<28x16xf32, #tpu.memory_space<vmem>>, vector<2x16xf32>
    %52 = arith.truncf %51 : vector<2x16xf32> to vector<2x16xbf16>
    %c2_42 = arith.constant 2 : index
    %c0_43 = arith.constant 0 : index
    %c0_44 = arith.constant 0 : index
    %53 = vector.load %arg8[%c2_42, %c0_43, %c0_44] : memref<12x16x100xbf16, #tpu.memory_space<vmem>>, vector<1x16x100xbf16>
    %54 = vector.shape_cast %53 : vector<1x16x100xbf16> to vector<16x100xbf16>
    %cst_45 = arith.constant dense<0.000000e+00> : vector<2x100xf32>
    %55 = tpu.matmul %52, %54, %cst_45 {dimension_numbers = #tpu.dot_dimension_numbers<[1], [0], [0], [1], [0, 0, 1, 1], [], []>} : vector<2x16xbf16>, vector<16x100xbf16>, vector<2x100xf32> -> vector<2x100xf32>
    %c3 = arith.constant 3 : index
    %c0_46 = arith.constant 0 : index
    %56 = tpu.strided_load %arg16[%c3, %c0_46] {strides = array<i32: 16, 1>} : memref<28x16xf32, #tpu.memory_space<vmem>>, vector<2x16xf32>
    %57 = arith.truncf %56 : vector<2x16xf32> to vector<2x16xbf16>
    %c3_47 = arith.constant 3 : index
    %c0_48 = arith.constant 0 : index
    %c0_49 = arith.constant 0 : index
    %58 = vector.load %arg8[%c3_47, %c0_48, %c0_49] : memref<12x16x100xbf16, #tpu.memory_space<vmem>>, vector<1x16x100xbf16>
    %59 = vector.shape_cast %58 : vector<1x16x100xbf16> to vector<16x100xbf16>
    %cst_50 = arith.constant dense<0.000000e+00> : vector<2x100xf32>
    %60 = tpu.matmul %57, %59, %cst_50 {dimension_numbers = #tpu.dot_dimension_numbers<[1], [0], [0], [1], [0, 0, 1, 1], [], []>} : vector<2x16xbf16>, vector<16x100xbf16>, vector<2x100xf32> -> vector<2x100xf32>
    %c4 = arith.constant 4 : index
    %c0_51 = arith.constant 0 : index
    %61 = tpu.strided_load %arg16[%c4, %c0_51] {strides = array<i32: 16, 1>} : memref<28x16xf32, #tpu.memory_space<vmem>>, vector<2x16xf32>
    %62 = arith.truncf %61 : vector<2x16xf32> to vector<2x16xbf16>
    %c4_52 = arith.constant 4 : index
    %c0_53 = arith.constant 0 : index
    %c0_54 = arith.constant 0 : index
    %63 = vector.load %arg8[%c4_52, %c0_53, %c0_54] : memref<12x16x100xbf16, #tpu.memory_space<vmem>>, vector<1x16x100xbf16>
    %64 = vector.shape_cast %63 : vector<1x16x100xbf16> to vector<16x100xbf16>
    %cst_55 = arith.constant dense<0.000000e+00> : vector<2x100xf32>
    %65 = tpu.matmul %62, %64, %cst_55 {dimension_numbers = #tpu.dot_dimension_numbers<[1], [0], [0], [1], [0, 0, 1, 1], [], []>} : vector<2x16xbf16>, vector<16x100xbf16>, vector<2x100xf32> -> vector<2x100xf32>
    %c5 = arith.constant 5 : index
    %c0_56 = arith.constant 0 : index
    %66 = tpu.strided_load %arg16[%c5, %c0_56] {strides = array<i32: 16, 1>} : memref<28x16xf32, #tpu.memory_space<vmem>>, vector<2x16xf32>
    %67 = arith.truncf %66 : vector<2x16xf32> to vector<2x16xbf16>
    %c5_57 = arith.constant 5 : index
    %c0_58 = arith.constant 0 : index
    %c0_59 = arith.constant 0 : index
    %68 = vector.load %arg8[%c5_57, %c0_58, %c0_59] : memref<12x16x100xbf16, #tpu.memory_space<vmem>>, vector<1x16x100xbf16>
    %69 = vector.shape_cast %68 : vector<1x16x100xbf16> to vector<16x100xbf16>
    %cst_60 = arith.constant dense<0.000000e+00> : vector<2x100xf32>
    %70 = tpu.matmul %67, %69, %cst_60 {dimension_numbers = #tpu.dot_dimension_numbers<[1], [0], [0], [1], [0, 0, 1, 1], [], []>} : vector<2x16xbf16>, vector<16x100xbf16>, vector<2x100xf32> -> vector<2x100xf32>
    %c6 = arith.constant 6 : index
    %c0_61 = arith.constant 0 : index
    %71 = tpu.strided_load %arg16[%c6, %c0_61] {strides = array<i32: 16, 1>} : memref<28x16xf32, #tpu.memory_space<vmem>>, vector<2x16xf32>
    %72 = arith.truncf %71 : vector<2x16xf32> to vector<2x16xbf16>
    %c6_62 = arith.constant 6 : index
    %c0_63 = arith.constant 0 : index
    %c0_64 = arith.constant 0 : index
    %73 = vector.load %arg8[%c6_62, %c0_63, %c0_64] : memref<12x16x100xbf16, #tpu.memory_space<vmem>>, vector<1x16x100xbf16>
    %74 = vector.shape_cast %73 : vector<1x16x100xbf16> to vector<16x100xbf16>
    %cst_65 = arith.constant dense<0.000000e+00> : vector<2x100xf32>
    %75 = tpu.matmul %72, %74, %cst_65 {dimension_numbers = #tpu.dot_dimension_numbers<[1], [0], [0], [1], [0, 0, 1, 1], [], []>} : vector<2x16xbf16>, vector<16x100xbf16>, vector<2x100xf32> -> vector<2x100xf32>
    %c7 = arith.constant 7 : index
    %c0_66 = arith.constant 0 : index
    %76 = tpu.strided_load %arg16[%c7, %c0_66] {strides = array<i32: 16, 1>} : memref<28x16xf32, #tpu.memory_space<vmem>>, vector<2x16xf32>
    %77 = arith.truncf %76 : vector<2x16xf32> to vector<2x16xbf16>
    %c7_67 = arith.constant 7 : index
    %c0_68 = arith.constant 0 : index
    %c0_69 = arith.constant 0 : index
    %78 = vector.load %arg8[%c7_67, %c0_68, %c0_69] : memref<12x16x100xbf16, #tpu.memory_space<vmem>>, vector<1x16x100xbf16>
    %79 = vector.shape_cast %78 : vector<1x16x100xbf16> to vector<16x100xbf16>
    %cst_70 = arith.constant dense<0.000000e+00> : vector<2x100xf32>
    %80 = tpu.matmul %77, %79, %cst_70 {dimension_numbers = #tpu.dot_dimension_numbers<[1], [0], [0], [1], [0, 0, 1, 1], [], []>} : vector<2x16xbf16>, vector<16x100xbf16>, vector<2x100xf32> -> vector<2x100xf32>
    %c8 = arith.constant 8 : index
    %c0_71 = arith.constant 0 : index
    %81 = tpu.strided_load %arg16[%c8, %c0_71] {strides = array<i32: 16, 1>} : memref<28x16xf32, #tpu.memory_space<vmem>>, vector<2x16xf32>
    %82 = arith.truncf %81 : vector<2x16xf32> to vector<2x16xbf16>
    %c8_72 = arith.constant 8 : index
    %c0_73 = arith.constant 0 : index
    %c0_74 = arith.constant 0 : index
    %83 = vector.load %arg8[%c8_72, %c0_73, %c0_74] : memref<12x16x100xbf16, #tpu.memory_space<vmem>>, vector<1x16x100xbf16>
    %84 = vector.shape_cast %83 : vector<1x16x100xbf16> to vector<16x100xbf16>
    %cst_75 = arith.constant dense<0.000000e+00> : vector<2x100xf32>
    %85 = tpu.matmul %82, %84, %cst_75 {dimension_numbers = #tpu.dot_dimension_numbers<[1], [0], [0], [1], [0, 0, 1, 1], [], []>} : vector<2x16xbf16>, vector<16x100xbf16>, vector<2x100xf32> -> vector<2x100xf32>
    %c9 = arith.constant 9 : index
    %c0_76 = arith.constant 0 : index
    %86 = tpu.strided_load %arg16[%c9, %c0_76] {strides = array<i32: 16, 1>} : memref<28x16xf32, #tpu.memory_space<vmem>>, vector<2x16xf32>
    %87 = arith.truncf %86 : vector<2x16xf32> to vector<2x16xbf16>
    %c9_77 = arith.constant 9 : index
    %c0_78 = arith.constant 0 : index
    %c0_79 = arith.constant 0 : index
    %88 = vector.load %arg8[%c9_77, %c0_78, %c0_79] : memref<12x16x100xbf16, #tpu.memory_space<vmem>>, vector<1x16x100xbf16>
    %89 = vector.shape_cast %88 : vector<1x16x100xbf16> to vector<16x100xbf16>
    %cst_80 = arith.constant dense<0.000000e+00> : vector<2x100xf32>
    %90 = tpu.matmul %87, %89, %cst_80 {dimension_numbers = #tpu.dot_dimension_numbers<[1], [0], [0], [1], [0, 0, 1, 1], [], []>} : vector<2x16xbf16>, vector<16x100xbf16>, vector<2x100xf32> -> vector<2x100xf32>
    %c10 = arith.constant 10 : index
    %c0_81 = arith.constant 0 : index
    %91 = tpu.strided_load %arg16[%c10, %c0_81] {strides = array<i32: 16, 1>} : memref<28x16xf32, #tpu.memory_space<vmem>>, vector<2x16xf32>
    %92 = arith.truncf %91 : vector<2x16xf32> to vector<2x16xbf16>
    %c10_82 = arith.constant 10 : index
    %c0_83 = arith.constant 0 : index
    %c0_84 = arith.constant 0 : index
    %93 = vector.load %arg8[%c10_82, %c0_83, %c0_84] : memref<12x16x100xbf16, #tpu.memory_space<vmem>>, vector<1x16x100xbf16>
    %94 = vector.shape_cast %93 : vector<1x16x100xbf16> to vector<16x100xbf16>
    %cst_85 = arith.constant dense<0.000000e+00> : vector<2x100xf32>
    %95 = tpu.matmul %92, %94, %cst_85 {dimension_numbers = #tpu.dot_dimension_numbers<[1], [0], [0], [1], [0, 0, 1, 1], [], []>} : vector<2x16xbf16>, vector<16x100xbf16>, vector<2x100xf32> -> vector<2x100xf32>
    %c11 = arith.constant 11 : index
    %c0_86 = arith.constant 0 : index
    %96 = tpu.strided_load %arg16[%c11, %c0_86] {strides = array<i32: 16, 1>} : memref<28x16xf32, #tpu.memory_space<vmem>>, vector<2x16xf32>
    %97 = arith.truncf %96 : vector<2x16xf32> to vector<2x16xbf16>
    %c11_87 = arith.constant 11 : index
    %c0_88 = arith.constant 0 : index
    %c0_89 = arith.constant 0 : index
    %98 = vector.load %arg8[%c11_87, %c0_88, %c0_89] : memref<12x16x100xbf16, #tpu.memory_space<vmem>>, vector<1x16x100xbf16>
    %99 = vector.shape_cast %98 : vector<1x16x100xbf16> to vector<16x100xbf16>
    %cst_90 = arith.constant dense<0.000000e+00> : vector<2x100xf32>
    %100 = tpu.matmul %97, %99, %cst_90 {dimension_numbers = #tpu.dot_dimension_numbers<[1], [0], [0], [1], [0, 0, 1, 1], [], []>} : vector<2x16xbf16>, vector<16x100xbf16>, vector<2x100xf32> -> vector<2x100xf32>
    %101 = arith.addf %45, %50 : vector<2x100xf32>
    %102 = arith.addf %55, %60 : vector<2x100xf32>
    %103 = arith.addf %65, %70 : vector<2x100xf32>
    %104 = arith.addf %75, %80 : vector<2x100xf32>
    %105 = arith.addf %85, %90 : vector<2x100xf32>
    %106 = arith.addf %95, %100 : vector<2x100xf32>
    %107 = arith.addf %101, %102 : vector<2x100xf32>
    %108 = arith.addf %103, %104 : vector<2x100xf32>
    %109 = arith.addf %105, %106 : vector<2x100xf32>
    %110 = arith.addf %107, %108 : vector<2x100xf32>
    %111 = arith.addf %110, %109 : vector<2x100xf32>
    %c0_91 = arith.constant 0 : index
    %c0_92 = arith.constant 0 : index
    %112 = vector.load %arg9[%c0_91, %c0_92] : memref<1x100xf32, #tpu.memory_space<vmem>>, vector<1x100xf32>
    %113 = vector.broadcast %112 : vector<1x100xf32> to vector<2x100xf32>
    %114 = arith.addf %111, %113 : vector<2x100xf32>
    %115 = arith.truncf %114 : vector<2x100xf32> to vector<2x100xbf16>
    %c0_93 = arith.constant 0 : index
    %c0_94 = arith.constant 0 : index
    %116 = vector.load %arg10[%c0_93, %c0_94] : memref<100x4xbf16, #tpu.memory_space<vmem>>, vector<100x4xbf16>
    %cst_95 = arith.constant dense<0.000000e+00> : vector<2x4xf32>
    %117 = tpu.matmul %115, %116, %cst_95 {dimension_numbers = #tpu.dot_dimension_numbers<[1], [0], [0], [1], [0, 0, 1, 1], [], []>} : vector<2x100xbf16>, vector<100x4xbf16>, vector<2x4xf32> -> vector<2x4xf32>
    %c0_96 = arith.constant 0 : index
    %c0_97 = arith.constant 0 : index
    %118 = vector.load %arg11[%c0_96, %c0_97] : memref<1x4xf32, #tpu.memory_space<vmem>>, vector<1x4xf32>
    %119 = vector.broadcast %118 : vector<1x4xf32> to vector<2x4xf32>
    %120 = arith.addf %117, %119 : vector<2x4xf32>
    %cst_98 = arith.constant 0.000000e+00 : f32
    %121 = vector.broadcast %cst_98 : f32 to vector<2x4xf32>
    %c28 = arith.constant 28 : index
    %c0_99 = arith.constant 0 : index
    %122 = tpu.strided_load %arg1[%c28, %c0_99] {strides = array<i32: 32, 1>} : memref<64x4xf32, #tpu.memory_space<vmem>>, vector<2x4xf32>
    %c0_100 = arith.constant 0 : index
    %123 = memref.load %arg12[%c0_100] : memref<4xf32, #tpu.memory_space<smem>>
    %124 = vector.broadcast %123 : f32 to vector<2x4xf32>
    %125 = arith.mulf %122, %124 : vector<2x4xf32>
    %126 = arith.addf %121, %125 : vector<2x4xf32>
    %c29 = arith.constant 29 : index
    %c0_101 = arith.constant 0 : index
    %127 = tpu.strided_load %arg1[%c29, %c0_101] {strides = array<i32: 32, 1>} : memref<64x4xf32, #tpu.memory_space<vmem>>, vector<2x4xf32>
    %c1_102 = arith.constant 1 : index
    %128 = memref.load %arg12[%c1_102] : memref<4xf32, #tpu.memory_space<smem>>
    %129 = vector.broadcast %128 : f32 to vector<2x4xf32>
    %130 = arith.mulf %127, %129 : vector<2x4xf32>
    %131 = arith.addf %126, %130 : vector<2x4xf32>
    %c30 = arith.constant 30 : index
    %c0_103 = arith.constant 0 : index
    %132 = tpu.strided_load %arg1[%c30, %c0_103] {strides = array<i32: 32, 1>} : memref<64x4xf32, #tpu.memory_space<vmem>>, vector<2x4xf32>
    %c2_104 = arith.constant 2 : index
    %133 = memref.load %arg12[%c2_104] : memref<4xf32, #tpu.memory_space<smem>>
    %134 = vector.broadcast %133 : f32 to vector<2x4xf32>
    %135 = arith.mulf %132, %134 : vector<2x4xf32>
    %136 = arith.addf %131, %135 : vector<2x4xf32>
    %c31 = arith.constant 31 : index
    %c0_105 = arith.constant 0 : index
    %137 = tpu.strided_load %arg1[%c31, %c0_105] {strides = array<i32: 32, 1>} : memref<64x4xf32, #tpu.memory_space<vmem>>, vector<2x4xf32>
    %c3_106 = arith.constant 3 : index
    %138 = memref.load %arg12[%c3_106] : memref<4xf32, #tpu.memory_space<smem>>
    %139 = vector.broadcast %138 : f32 to vector<2x4xf32>
    %140 = arith.mulf %137, %139 : vector<2x4xf32>
    %141 = arith.addf %136, %140 : vector<2x4xf32>
    %142 = arith.addf %120, %141 : vector<2x4xf32>
    %c0_107 = arith.constant 0 : index
    %143 = memref.load %arg13[%c0_107] : memref<1xf32, #tpu.memory_space<smem>>
    %144 = vector.broadcast %143 : f32 to vector<2x4xf32>
    %145 = arith.addf %142, %144 : vector<2x4xf32>
    %146 = arith.negf %145 : vector<2x4xf32>
    %147 = math.exp %146 : vector<2x4xf32>
    %cst_108 = arith.constant 1.000000e+00 : f32
    %148 = vector.broadcast %cst_108 : f32 to vector<2x4xf32>
    %149 = arith.addf %148, %147 : vector<2x4xf32>
    %150 = arith.divf %148, %149 : vector<2x4xf32>
    %151 = vector.shape_cast %150 : vector<2x4xf32> to vector<1x2x4xf32>
    %c0_109 = arith.constant 0 : index
    %c0_110 = arith.constant 0 : index
    %c0_111 = arith.constant 0 : index
    %152 = vector.load %arg14[%c0_109, %c0_110, %c0_111] : memref<1x2x4xf32, #tpu.memory_space<vmem>>, vector<1x2x4xf32>
    tpu.vector_store %arg14[%c0_109, %c0_110, %c0_111], %151 {strides = array<i32>} : memref<1x2x4xf32, #tpu.memory_space<vmem>>, vector<1x2x4xf32>,
    return
  }
  func.func @transform_0(%arg0: i32) -> (i32, i32) {
    %c0_i32 = arith.constant 0 : i32
    %c0_i32_0 = arith.constant 0 : i32
    return %arg0, %c0_i32 : i32, i32
  }
  func.func @transform_1(%arg0: i32) -> (i32, i32) {
    %c0_i32 = arith.constant 0 : i32
    %c0_i32_0 = arith.constant 0 : i32
    %c0_i32_1 = arith.constant 0 : i32
    return %c0_i32, %c0_i32_0 : i32, i32
  }
  func.func @transform_2(%arg0: i32) -> (i32, i32) {
    %c0_i32 = arith.constant 0 : i32
    %c0_i32_0 = arith.constant 0 : i32
    %c0_i32_1 = arith.constant 0 : i32
    return %c0_i32, %c0_i32_0 : i32, i32
  }
  func.func @transform_3(%arg0: i32) -> (i32, i32) {
    %c0_i32 = arith.constant 0 : i32
    %c0_i32_0 = arith.constant 0 : i32
    %c0_i32_1 = arith.constant 0 : i32
    return %c0_i32, %c0_i32_0 : i32, i32
  }
  func.func @transform_4(%arg0: i32) -> (i32, i32) {
    %c0_i32 = arith.constant 0 : i32
    %c0_i32_0 = arith.constant 0 : i32
    %c0_i32_1 = arith.constant 0 : i32
    return %c0_i32, %c0_i32_0 : i32, i32
  }
  func.func @transform_5(%arg0: i32) -> (i32, i32) {
    %c0_i32 = arith.constant 0 : i32
    %c0_i32_0 = arith.constant 0 : i32
    %c0_i32_1 = arith.constant 0 : i32
    return %c0_i32, %c0_i32_0 : i32, i32
  }
  func.func @transform_6(%arg0: i32) -> (i32, i32) {
    %c0_i32 = arith.constant 0 : i32
    %c0_i32_0 = arith.constant 0 : i32
    %c0_i32_1 = arith.constant 0 : i32
    return %c0_i32, %c0_i32_0 : i32, i32
  }
  func.func @transform_7(%arg0: i32) -> (i32, i32, i32) {
    %c0_i32 = arith.constant 0 : i32
    %c0_i32_0 = arith.constant 0 : i32
    %c0_i32_1 = arith.constant 0 : i32
    %c0_i32_2 = arith.constant 0 : i32
    return %c0_i32, %c0_i32_0, %c0_i32_1 : i32, i32, i32
  }
  func.func @transform_8(%arg0: i32) -> (i32, i32) {
    %c0_i32 = arith.constant 0 : i32
    %c0_i32_0 = arith.constant 0 : i32
    %c0_i32_1 = arith.constant 0 : i32
    return %c0_i32, %c0_i32_0 : i32, i32
  }
  func.func @transform_9(%arg0: i32) -> (i32, i32) {
    %c0_i32 = arith.constant 0 : i32
    %c0_i32_0 = arith.constant 0 : i32
    %c0_i32_1 = arith.constant 0 : i32
    return %c0_i32, %c0_i32_0 : i32, i32
  }
  func.func @transform_10(%arg0: i32) -> (i32, i32) {
    %c0_i32 = arith.constant 0 : i32
    %c0_i32_0 = arith.constant 0 : i32
    %c0_i32_1 = arith.constant 0 : i32
    return %c0_i32, %c0_i32_0 : i32, i32
  }
  func.func @transform_11(%arg0: i32) -> i32 {
    %c0_i32 = arith.constant 0 : i32
    %c0_i32_0 = arith.constant 0 : i32
    return %c0_i32 : i32
  }
  func.func @transform_12(%arg0: i32) -> i32 {
    %c0_i32 = arith.constant 0 : i32
    %c0_i32_0 = arith.constant 0 : i32
    return %c0_i32 : i32
  }
  func.func @transform_13(%arg0: i32) -> (i32, i32, i32) {
    %c0_i32 = arith.constant 0 : i32
    %c0_i32_0 = arith.constant 0 : i32
    %c0_i32_1 = arith.constant 0 : i32
    return %arg0, %c0_i32, %c0_i32_0 : i32, i32, i32
  }
}

</mosaic_0001>

<bundles_post_ra>
// kernel: tpu_custom_call.1
= control target key start
LH: loop header
LB: loop body
LE: loop exit
PB: predicated region body
PF: predicated region fallthrough
CT: control target
= control target key end

     0   :  { %19 = vsyncpa [#allocation7], 0  ;;  %s2524_s0 = inlined_call_operand.vmem [shape: f32[64,4], index: 0, kind: input, shape index: {}]   ;;  %s2525_s1 = inlined_call_operand.vmem [shape: bf16[12,32], index: 1, kind: input, shape index: {}]   ;;  %s2526_s2 = inlined_call_operand.vmem [shape: f32[1,32], index: 2, kind: input, shape index: {}]   ;;  %s2527_s3 = inlined_call_operand.vmem [shape: bf16[96,32], index: 3, kind: input, shape index: {}]   ;;  %s2528_s4 = inlined_call_operand.vmem [shape: f32[1,32], index: 4, kind: input, shape index: {}]   ;;  %s2529_s5 = inlined_call_operand.vmem [shape: bf16[96,16], index: 5, kind: input, shape index: {}]   ;;  %s2530_s6 = inlined_call_operand.vmem [shape: f32[1,16], index: 6, kind: input, shape index: {}]   ;;  %s2531_s7 = inlined_call_operand.vmem [shape: bf16[12,16,100], index: 7, kind: input, shape index: {}]   ;;  %s2532_s8 = inlined_call_operand.vmem [shape: f32[1,100], index: 8, kind: input, shape index: {}]   ;;  %s2533_s9 = inlined_call_operand.vmem [shape: bf16[100,4], index: 9, kind: input, shape index: {}]   ;;  %s2534_s10 = inlined_call_operand.vmem [shape: f32[1,4], index: 10, kind: input, shape index: {}]   ;;  %s2535_s11 = inlined_call_operand.vmem [shape: f32[4], index: 11, kind: input, shape index: {}]   ;;  %s2536_s12 = inlined_call_operand.<no memory space> [shape: f32[1], index: 12, kind: input, shape index: {}]   ;;  %s2537_s13 = inlined_call_operand.hbm [shape: f32[1,2,4], index: 13, kind: output, shape index: {}]  }
   0x1   :  { %20 = vsyncpa [#allocation6], 0  ;;  %s49_s27 = sshll.u32 %s2535_s11, 4  ;;  %s50_s27 = int_to_ptr.vmem [resolvable:$true] %s49_s27 }
   0x2   :  { %s1992_s28 = scalar_lea.vmem %s50_s27, 16  ;;  %p1997_p1 = scmp.lt.s32.totalorder %s50_s27, %s50_s27 }
   0x3   :  { %p1993_p0 = scmp.ne.s32.totalorder %s50_s27, %s1992_s28  ;;  %p1998_p2 = scmp.lt.s32.totalorder %s1992_s28, %s1992_s28 }
   0x5   :  { %p1999_p3 = por %p1998_p2, %p1997_p1 }
   0x7   :  { %p2000_p4 = pnand %p1999_p3, %p1993_p0 }
   0x9   :  { %2003 = shalt.err (!%p2000_p4)
}
   0xa   :  { %s2030_s29 = smov [#allocation5]  }
   0xb   :  { %52 = dma.vmem_to_smem %s50_s27, 16, %s2030_s29, [#allocation7]  }
   0xc   :  { %2026 = dma.done.wait [#allocation7], 16  }
   0xd   :  { %2027 = vsyncadd [#allocation7], 4294967280 }
   0xe   :  { %58 = sfence }
   0xf   :  { %v76_v0 = vld [vmem:[%s2524_s0 + $0x2] sm:$0xff]  ;;  %v77_v1 = vld [vmem:[%s2524_s0 + $0xa] sm:$0xff]  ;;  %v78_v5 = vld [vmem:[%s2524_s0 + $0x12] sm:$0xff]  ;;  %s2031_s28 = smov 8   ;;  %s2032_s29 = smov 4   ;;  %vm197_vm0 = vcmask 1045504  }
  0x10   :  { %v68_v2 = vld [vmem:[%s2524_s0 + $0x1] sm:$0xff]  ;;  %v1866_v3 = vpack.i.bf16 %v77_v1, %v76_v0  ;;  %v69_v4 = vld [vmem:[%s2524_s0 + $0x9] sm:$0xff]  ;;  %v70_v8 = vld [vmem:[%s2524_s0 + $0x11] sm:$0xff]  ;;  %vm148_vm1 = vcmask 31744   ;;  %vm157_vm2 = vcmask 64512   ;;  %vm184_vm3 = vcmask 97280  }
  0x11   :  { %v79_v6 = vld [vmem:[%s2524_s0 + $0x1a] sm:$0xff]  ;;  %v1856_v7 = vpack.i.bf16 %v69_v4, %v68_v2  ;;  %v74_v12 = vld [vmem:[%s2524_s0 + $0x31] sm:$0xff]  ;;  %v73_v15 = vld [vmem:[%s2524_s0 + $0x29] sm:$0xff]  ;;  %vm282_vm4 = vcmask 1046528   ;;  %s2033_s21 = smov 32   ;;  %vm361_vm5 = vcmask 261120  }
  0x12   :  { %v71_v9 = vld [vmem:[%s2524_s0 + $0x19] sm:$0xff]  ;;  %1867 = vrot.lane.b32.xlu1 %v1866_v3, %s2031_s28  ;;  %v1871_v10 = vpack.i.bf16 %v79_v6, %v78_v5  ;;  %v72_v14 = vld [vmem:[%s2524_s0 + $0x21] sm:$0xff]  ;;  %v81_v22 = vld [vmem:[%s2524_s0 + $0x2a] sm:$0xff]  ;;  %vm370_vm6 = vcmask 523264   ;;  %vm438_vm7 = vcmask 785408   ;;  %vm531_vm8 = vcmask 257024  }
  0x13   :  { %1857 = vrot.lane.b32.xlu0 %v1856_v7, %s2032_s29  ;;  %v1861_v11 = vpack.i.bf16 %v71_v9, %v70_v8  ;;  %v75_v13 = vld [vmem:[%s2524_s0 + $0x39] sm:$0x3f]  ;;  %v1956_v16 = vld [vmem:[%s2525_s1] sm:$0x3f]   ;;  %v1876_v19 = vpack.i.bf16 %v73_v15, %v72_v14  ;;  %v61_v31 = vld [vmem:[%s2524_s0 + $0x8] sm:$0xff]  ;;  %vm2036_vm9 = vmmov 0  }
  0x14   :  { %v1881_v17 = vpack.i.bf16 %v75_v13, %v74_v12  ;;  %v82_v18 = vld [vmem:[%s2524_s0 + $0x32] sm:$0xff]  ;;  %v83_v20 = vld [vmem:[%s2524_s0 + $0x3a] sm:$0x3f]  ;;  %v80_v21 = vld [vmem:[%s2524_s0 + $0x22] sm:$0xff]  ;;  %1847 = vmatprep.subr.msk.bf16.mxu0 %vm197_vm0, %v1956_v16  ;;  %v199_v23 = vsel %vm197_vm0, %v1956_v16, 0  ;;  %vm718_vm10 = vcmask 130048  }
  0x15   :  { %1712 = vmatpush3.bf16.msra.mxu0 %v199_v23  ;;  %v1891_v24 = vpack.i.bf16 %v83_v20, %v82_v18  ;;  %v1886_v25 = vpack.i.bf16 %v81_v22, %v80_v21  ;;  %v60_v30 = vld [vmem:[%s2524_s0] sm:$0xff]  ;;  %v62_v40 = vld [vmem:[%s2524_s0 + $0x10] sm:$0xff]  ;;  %v63_v41 = vld [vmem:[%s2524_s0 + $0x18] sm:$0xff]  ;;  %vm722_vm11 = vcmask 125952   ;;  %vm1459_vm12 = vcmask 1041408   ;;  %s1507_s30 = sld [smem:[#allocation5]] }
  0x16   :  { %1872 = vrot.lane.b32.xlu1 %v1871_v10, %s2031_s28  ;;  %v66_v56 = vld [vmem:[%s2524_s0 + $0x30] sm:$0xff]  ;;  %v67_v57 = vld [vmem:[%s2524_s0 + $0x38] sm:$0x3f]  ;;  %v64_v60 = vld [vmem:[%s2524_s0 + $0x20] sm:$0xff]  ;;  %vm1455_vm13 = vcmask 818176   ;;  %s1648_s14 = sld [smem:[#allocation5 + $0x1]] }
  0x17   :  { %1862 = vrot.lane.b32.xlu0 %v1861_v11, %s2032_s29  ;;  %v65_v61 = vld [vmem:[%s2524_s0 + $0x28] sm:$0xff]  ;;  %v1957_v14 = vld [vmem:[%s2527_s3] sm:$0xff]   ;;  %v1959_v16 = vld [vmem:[%s2527_s3 + $0x10] sm:$0xff]   ;;  %s1651_s1 = sld [smem:[#allocation5 + $0x2]]  ;;  %s1654_s19 = sld [smem:[#allocation5 + $0x3]]  ;;  %vm1545_vm14 = vcmask 25600  }
  0x18   :  { %v1958_v15 = vld [vmem:[%s2527_s3 + $0x8] sm:$0xff]   ;;  %1721 = vmatprep.subr.bf16.mxu1 %v1957_v14 }
  0x19   :  { %1722 = vmatpush3.bf16.msra.mxu1 %v1957_v14 }
  0x1a   :  { %1882 = vrot.lane.b32.xlu1 %v1881_v17, %s2032_s29  ;;  %1723 = vmatprep.subr.bf16.mxu1 %v1958_v15  ;;  %v1562_v17 = vld [vmem:[%s2526_s2] ss:$0 sm:$0xff] }
  0x1b   :  { %1877 = vrot.lane.b32.xlu0 %v1876_v19, %s2032_s29  ;;  %v1960_v19 = vld [vmem:[%s2527_s3 + $0x18] sm:$0xff]  }
  0x1d   :  { %1724 = vmatpush3.bf16.msra.mxu1 %v1958_v15 }
  0x1e   :  { %1892 = vrot.lane.b32.xlu1 %v1891_v24, %s2031_s28  ;;  %1725 = vmatprep.subr.bf16.mxu1 %v1959_v16 }
  0x1f   :  { %1887 = vrot.lane.b32.xlu0 %v1886_v25, %s2031_s28 }
  0x21   :  { %1726 = vmatpush3.bf16.msra.mxu1 %v1959_v16 }
  0x22   :  { %1727 = vmatprep.subr.bf16.mxu1 %v1960_v19 }
  0x25   :  { %1728 = vmatpush3.bf16.msra.mxu1 %v1960_v19 }
  0x84   :  { %v1868_v26 = vpop.permute.xlu1 %1867 }
  0x85   :  { %v1870_v27 = vunpack.i.h.bf16 %v1868_v26  ;;  %v1869_v28 = vunpack.i.l.bf16 %v1868_v26  ;;  %v1858_v29 = vpop.permute.xlu0 %1857 }
  0x86   :  { %v1860_v32 = vunpack.i.h.bf16 %v1858_v29  ;;  %v1859_v33 = vunpack.i.l.bf16 %v1858_v29 }
  0x88   :  { %v1873_v34 = vpop.permute.xlu1 %1872  ;;  %v149_v35 = vsel %vm148_vm1, %v60_v30, %v1859_v33  ;;  %v150_v36 = vsel %vm148_vm1, %v61_v31, %v1860_v32  ;;  %v1961_v30 = vld [vmem:[%s2527_s3 + $0x20] sm:$0xff]  }
  0x89   :  { %v1875_v37 = vunpack.i.h.bf16 %v1873_v34  ;;  %v1874_v38 = vunpack.i.l.bf16 %v1873_v34  ;;  %v1863_v39 = vpop.permute.xlu0 %1862  ;;  %v158_v42 = vsel %vm157_vm2, %v149_v35, %v1869_v28  ;;  %v159_v43 = vsel %vm157_vm2, %v150_v36, %v1870_v27  ;;  %1729 = vmatprep.subr.bf16.mxu1 %v1961_v30 }
  0x8a   :  { %v1865_v44 = vunpack.i.h.bf16 %v1863_v39  ;;  %v1864_v45 = vunpack.i.l.bf16 %v1863_v39  ;;  %v166_v46 = vpack.c.bf16 %v159_v43, %v158_v42  ;;  %1730 = vmatpush3.bf16.msra.mxu1 %v1961_v30 }
  0x8c   :  { %v151_v47 = vsel %vm148_vm1, %v62_v40, %v1864_v45  ;;  %v152_v48 = vsel %vm148_vm1, %v63_v41, %v1865_v44  ;;  %1713 = vmatprep.mubr.msk.bf16.mxu0 %vm184_vm3, %v166_v46  ;;  %v1883_v49 = vpop.permute.xlu1 %1882  ;;  %v1962_v45 = vld [vmem:[%s2527_s3 + $0x28] sm:$0xff]   ;;  %s2034_s3 = smov 64  }
  0x8d   :  { %v1878_v50 = vpop.permute.xlu0 %1877  ;;  %v160_v51 = vsel %vm157_vm2, %v151_v47, %v1874_v38  ;;  %v161_v52 = vsel %vm157_vm2, %v152_v48, %v1875_v37  ;;  %v1885_v53 = vunpack.i.h.bf16 %v1883_v49  ;;  %v1884_v54 = vunpack.i.l.bf16 %v1883_v49  ;;  %1731 = vmatprep.subr.bf16.mxu1 %v1962_v45 }
  0x8e   :  { %v167_v55 = vpack.c.bf16 %v161_v52, %v160_v51  ;;  %v1880_v58 = vunpack.i.h.bf16 %v1878_v50  ;;  %v1879_v59 = vunpack.i.l.bf16 %v1878_v50  ;;  %1732 = vmatpush3.bf16.msra.mxu1 %v1962_v45 }
  0x8f   :  { %v155_v2 = vsel %vm148_vm1, %v66_v56, %v1884_v54  ;;  %v156_v3 = vsel %vm148_vm1, %v67_v57, %v1885_v53 }
  0x90   :  { %1714 = vmatmul.mubr.msk.bf16.vlgmr.msra.gmra.mrb[0].mxu0 %vm184_vm3, %v167_v55  ;;  %v1893_v62 = vpop.permute.xlu1 %1892  ;;  %v153_v6 = vsel %vm148_vm1, %v64_v60, %v1879_v59  ;;  %v154_v7 = vsel %vm148_vm1, %v65_v61, %v1880_v58 }
  0x91   :  { %v1895_v63 = vunpack.i.h.bf16 %v1893_v62  ;;  %v1894_v0 = vunpack.i.l.bf16 %v1893_v62  ;;  %v1888_v1 = vpop.permute.xlu0 %1887 }
  0x92   :  { %v1890_v4 = vunpack.i.h.bf16 %v1888_v1  ;;  %v1889_v5 = vunpack.i.l.bf16 %v1888_v1 }
  0x93   :  { %v164_v8 = vsel %vm157_vm2, %v155_v2, %v1894_v0  ;;  %v165_v9 = vsel %vm157_vm2, %v156_v3, %v1895_v63 }
  0x94   :  { %v169_v10 = vpack.c.bf16 %v165_v9, %v164_v8  ;;  %v162_v11 = vsel %vm157_vm2, %v153_v6, %v1889_v5  ;;  %v163_v12 = vsel %vm157_vm2, %v154_v7, %v1890_v4 }
  0x95   :  { %v168_v13 = vpack.c.bf16 %v163_v12, %v162_v11 }
  0x97   :  { %1717 = vmatprep.mubr.msk.bf16.mxu0 %vm184_vm3, %v168_v13 }
  0x98   :  { %1718 = vmatmul.mubr.msk.bf16.gmra.mrb[4].mxu0 %vm184_vm3, %v169_v10 }
 0x163   :  { %v1715_v18 = vpop.f32.mrb[0].mxu0 }
 0x164   :  { %v244_v20 = vadd.f32 %v1715_v18, %v1562_v17  ;;  %v235_v21 = vpop.f32.mrb[1].mxu0 }
 0x165   :  { %v236_v22 = vadd.f32 %v1562_v17, %v235_v21  ;;  %v1716_v23 = vpop.f32.mrb[2].mxu0 }
 0x166   :  { %v247_v24 = vadd.f32 %v1716_v23, %v1562_v17  ;;  %v238_v25 = vpop.f32.mrb[3].mxu0  ;;  %v2223_v26 = vmax.f32 %v244_v20, 0.0 }
 0x167   :  { %v2225_v27 = vmax.f32 %v236_v22, 0.0  ;;  %v239_v28 = vadd.f32 %v1562_v17, %v238_v25 }
 0x168   :  { %v2232_v31 = vmax.f32 %v247_v24, 0.0  ;;  %v286_v32 = vrot.slane %v2223_v26, 1  ;;  %v325_v40 = vrot.slane %v2223_v26, 2 }
 0x169   :  { %v2227_v29 = vmax.f32 %v239_v28, 0.0  ;;  %v283_v33 = vrot.slane %v2225_v27, 1  ;;  %v322_v37 = vrot.slane %v2225_v27, 2 }
 0x16a   :  { %v288_v46 = vrot.slane %v2232_v31, 1  ;;  %v327_v59 = vrot.slane %v2232_v31, 2 }
 0x16b   :  { %v284_v34 = vrot.slane %v2227_v29, 1  ;;  %v323_v35 = vrot.slane %v2227_v29, 2  ;;  %v1719_v36 = vpop.f32.mrb[4].mxu0 }
 0x16c   :  { %v260_v38 = vadd.f32 %v1719_v36, %v1562_v17  ;;  %v251_v39 = vpop.f32.mrb[5].mxu0  ;;  %v289_v61 = vsel %vm282_vm4, %v286_v32, %v288_v46  ;;  %v328_v9 = vsel %vm197_vm0, %v325_v40, %v327_v59 }
 0x16d   :  { %v252_v41 = vadd.f32 %v1562_v17, %v251_v39  ;;  %v1720_v42 = vpop.f32.mrb[6].mxu0  ;;  %v285_v43 = vsel %vm282_vm4, %v283_v33, %v284_v34  ;;  %v287_v44 = vsel %vm282_vm4, %v284_v34, %v286_v32  ;;  %v324_v50 = vsel %vm197_vm0, %v322_v37, %v323_v35 }
 0x16e   :  { %v263_v47 = vadd.f32 %v1720_v42, %v1562_v17  ;;  %v254_v48 = vpop.f32.mrb[7].mxu0  ;;  %v1896_v49 = vpack.i.bf16 %v287_v44, %v285_v43  ;;  %v2247_v51 = vmax.f32 %v260_v38, 0.0  ;;  %v326_v54 = vsel %vm197_vm0, %v323_v35, %v325_v40 }
 0x16f   :  { %v2249_v52 = vmax.f32 %v252_v41, 0.0  ;;  %v255_v53 = vadd.f32 %v1562_v17, %v254_v48  ;;  %v1901_v60 = vpack.i.bf16 %v326_v54, %v324_v50 }
 0x170   :  { %1897 = vrot.lane.b32.xlu0 %v1896_v49, %s2033_s21  ;;  %v2255_v57 = vmax.f32 %v263_v47, 0.0  ;;  %v294_v62 = vrot.slane %v2247_v51, 1  ;;  %v333_v2 = vrot.slane %v2247_v51, 2 }
 0x171   :  { %v290_v55 = vrot.slane %v2249_v52, 1  ;;  %v329_v56 = vrot.slane %v2249_v52, 2  ;;  %v2257_v58 = vmax.f32 %v255_v53, 0.0 }
 0x172   :  { %v296_v4 = vrot.slane %v2255_v57, 1  ;;  %v335_v13 = vrot.slane %v2255_v57, 2 }
 0x173   :  { %v292_v63 = vrot.slane %v2257_v58, 1  ;;  %v331_v0 = vrot.slane %v2257_v58, 2  ;;  %v291_v1 = vsel %vm282_vm4, %v288_v46, %v290_v55  ;;  %v330_v7 = vsel %vm197_vm0, %v327_v59, %v329_v56 }
 0x174   :  { %1902 = vrot.lane.b32.xlu0 %v1901_v60, %s2034_s3  ;;  %v1906_v3 = vpack.i.bf16 %v291_v1, %v289_v61  ;;  %v1911_v12 = vpack.i.bf16 %v330_v7, %v328_v9  ;;  %v297_v14 = vsel %vm282_vm4, %v294_v62, %v296_v4  ;;  %v336_v17 = vsel %vm197_vm0, %v333_v2, %v335_v13  ;;  %v1963_v1 = vld [vmem:[%s2529_s5] sm:$0xff]  }
 0x175   :  { %v293_v5 = vsel %vm282_vm4, %v290_v55, %v292_v63  ;;  %v295_v6 = vsel %vm282_vm4, %v292_v63, %v294_v62  ;;  %v332_v10 = vsel %vm197_vm0, %v329_v56, %v331_v0  ;;  %v334_v11 = vsel %vm197_vm0, %v331_v0, %v333_v2  ;;  %v1964_v2 = vld [vmem:[%s2529_s5 + $0x8] sm:$0xff]   ;;  %1741 = vmatprep.subr.bf16.mxu1 %v1963_v1 }
 0x176   :  { %1907 = vrot.lane.b32.xlu1 %v1906_v3, %s2033_s21  ;;  %v1921_v8 = vpack.i.bf16 %v295_v6, %v293_v5  ;;  %v1926_v15 = vpack.i.bf16 %v334_v11, %v332_v10  ;;  %v1916_v16 = vpack.i.bf16 %v296_v4, %v297_v14  ;;  %v1931_v18 = vpack.i.bf16 %v335_v13, %v336_v17  ;;  %v1568_v3 = vld [vmem:[%s2528_s4] ss:$0 sm:$0xff] }
 0x178   :  { %1922 = vrot.lane.b32.xlu0 %v1921_v8, %s2033_s21 }
 0x17a   :  { %1912 = vrot.lane.b32.xlu1 %v1911_v12, %s2034_s3 }
 0x17c   :  { %1927 = vrot.lane.b32.xlu0 %v1926_v15, %s2034_s3 }
 0x17e   :  { %1917 = vrot.lane.b32.xlu1 %v1916_v16, %s2033_s21 }
 0x182   :  { %1932 = vrot.lane.b32.xlu1 %v1931_v18, %s2034_s3 }
 0x1e2   :  { %v1898_v19 = vpop.permute.xlu0 %1897 }
 0x1e3   :  { %v1900_v20 = vunpack.i.h.bf16 %v1898_v19  ;;  %v1899_v21 = vunpack.i.l.bf16 %v1898_v19 }
 0x1e5   :  { %v362_v28 = vsel %vm361_vm5, %v2225_v27, %v1899_v21  ;;  %v363_v30 = vsel %vm361_vm5, %v2227_v29, %v1900_v20 }
 0x1e6   :  { %v1903_v22 = vpop.permute.xlu0 %1902 }
 0x1e7   :  { %v1905_v23 = vunpack.i.h.bf16 %v1903_v22  ;;  %v1904_v24 = vunpack.i.l.bf16 %v1903_v22 }
 0x1e8   :  { %v1908_v25 = vpop.permute.xlu1 %1907 }
 0x1e9   :  { %v371_v32 = vsel %vm370_vm6, %v362_v28, %v1904_v24  ;;  %v372_v33 = vsel %vm370_vm6, %v363_v30, %v1905_v23  ;;  %v1910_v34 = vunpack.i.h.bf16 %v1908_v25  ;;  %v1909_v35 = vunpack.i.l.bf16 %v1908_v25 }
 0x1ea   :  { %v1923_v36 = vpop.permute.xlu0 %1922  ;;  %v379_v37 = vpack.c.bf16 %v372_v33, %v371_v32 }
 0x1eb   :  { %v1925_v38 = vunpack.i.h.bf16 %v1923_v36  ;;  %v1924_v39 = vunpack.i.l.bf16 %v1923_v36  ;;  %v365_v27 = vsel %vm361_vm5, %v2232_v31, %v1910_v34  ;;  %v364_v29 = vsel %vm361_vm5, %v2223_v26, %v1909_v35  ;;  %v1967_v36 = vld [vmem:[%s2529_s5 + $0x20] sm:$0xff]  }
 0x1ec   :  { %v1913_v40 = vpop.permute.xlu1 %1912  ;;  %1733 = vmatprep.mubr.msk.bf16.mxu1 %vm438_vm7, %v379_v37 }
 0x1ed   :  { %v1915_v41 = vunpack.i.h.bf16 %v1913_v40  ;;  %v1914_v42 = vunpack.i.l.bf16 %v1913_v40  ;;  %v367_v48 = vsel %vm361_vm5, %v2257_v58, %v1925_v38  ;;  %v366_v49 = vsel %vm361_vm5, %v2249_v52, %v1924_v39 }
 0x1ee   :  { %v1928_v43 = vpop.permute.xlu0 %1927 }
 0x1ef   :  { %v373_v44 = vsel %vm370_vm6, %v364_v29, %v1914_v42  ;;  %v374_v45 = vsel %vm370_vm6, %v365_v27, %v1915_v41  ;;  %v1930_v46 = vunpack.i.h.bf16 %v1928_v43  ;;  %v1929_v47 = vunpack.i.l.bf16 %v1928_v43  ;;  %v1968_v29 = vld [vmem:[%s2529_s5 + $0x28] sm:$0xff]  }
 0x1f0   :  { %v380_v50 = vpack.c.bf16 %v374_v45, %v373_v44  ;;  %v1918_v53 = vpop.permute.xlu1 %1917 }
 0x1f1   :  { %v375_v31 = vsel %vm370_vm6, %v366_v49, %v1929_v47  ;;  %v376_v54 = vsel %vm370_vm6, %v367_v48, %v1930_v46  ;;  %v1920_v55 = vunpack.i.h.bf16 %v1918_v53  ;;  %v1919_v56 = vunpack.i.l.bf16 %v1918_v53 }
 0x1f2   :  { %v381_v26 = vpack.c.bf16 %v376_v54, %v375_v31  ;;  %1734 = vmatmul.mubr.msk.bf16.vlgmr.msra.gmra.mrb[0].mxu1 %vm438_vm7, %v380_v50 }
 0x1f3   :  { %v369_v58 = vsel %vm361_vm5, %v2255_v57, %v1920_v55  ;;  %v368_v52 = vsel %vm361_vm5, %v2247_v51, %v1919_v56  ;;  %1742 = vmatpush3.bf16.msra.mxu1 %v1963_v1  ;;  %v1965_v51 = vld [vmem:[%s2529_s5 + $0x10] sm:$0xff]   ;;  %v1966_v57 = vld [vmem:[%s2529_s5 + $0x18] sm:$0xff]  }
 0x1f4   :  { %v1933_v59 = vpop.permute.xlu1 %1932  ;;  %1737 = vmatprep.mubr.msk.bf16.mxu1 %vm438_vm7, %v381_v26  ;;  %1743 = vmatprep.subr.bf16.mxu1 %v1964_v2 }
 0x1f5   :  { %v1935_v60 = vunpack.i.h.bf16 %v1933_v59  ;;  %v1934_v61 = vunpack.i.l.bf16 %v1933_v59 }
 0x1f7   :  { %v377_v62 = vsel %vm370_vm6, %v368_v52, %v1934_v61  ;;  %v378_v63 = vsel %vm370_vm6, %v369_v58, %v1935_v60  ;;  %1744 = vmatpush3.bf16.msra.mxu1 %v1964_v2  ;;  %v2035_v58 = vmov 0.0  }
 0x1f8   :  { %v382_v0 = vpack.c.bf16 %v378_v63, %v377_v62  ;;  %1745 = vmatprep.subr.bf16.mxu1 %v1965_v51  ;;  %1757 = vmatprep.subr.bf16.mxu0 %v2035_v58 }
 0x1f9   :  { %1759 = vmatprep.mubr.msk.bf16.mxu0 %vm2036_vm9, %v2035_v58 }
 0x1fa   :  { %1738 = vmatmul.mubr.msk.bf16.gmra.mrb[4].mxu1 %vm438_vm7, %v382_v0 }
 0x1fb   :  { %1746 = vmatpush3.bf16.msra.mxu1 %v1965_v51 }
 0x1fc   :  { %1747 = vmatprep.subr.bf16.mxu1 %v1966_v57 }
 0x1ff   :  { %1748 = vmatpush3.bf16.msra.mxu1 %v1966_v57 }
 0x200   :  { %1749 = vmatprep.subr.bf16.mxu1 %v1967_v36 }
 0x203   :  { %1750 = vmatpush3.bf16.msra.mxu1 %v1967_v36 }
 0x204   :  { %1751 = vmatprep.subr.bf16.mxu1 %v1968_v29 }
 0x207   :  { %1752 = vmatpush3.bf16.msra.mxu1 %v1968_v29 }
 0x208   :  { %1763 = vmatprep.subr.bf16.mxu1 %v2035_v58 }
 0x2c5   :  { %v1735_v4 = vpop.f32.mrb[0].mxu1 }
 0x2c6   :  { %v494_v5 = vadd.f32 %v1735_v4, %v1568_v3  ;;  %v485_v6 = vpop.f32.mrb[1].mxu1 }
 0x2c7   :  { %v486_v7 = vadd.f32 %v1568_v3, %v485_v6  ;;  %v1736_v8 = vpop.f32.mrb[2].mxu1 }
 0x2c8   :  { %v518_v9 = vmax.f32 %v494_v5, 0.0  ;;  %v497_v10 = vadd.f32 %v1736_v8, %v1568_v3  ;;  %v488_v11 = vpop.f32.mrb[3].mxu1 }
 0x2c9   :  { %v516_v12 = vmax.f32 %v486_v7, 0.0  ;;  %v489_v13 = vadd.f32 %v1568_v3, %v488_v11 }
 0x2ca   :  { %526 = vst.msk [vmem:[#allocation2 + $0x10] sm:$0xff] %vm361_vm5, %v518_v9  ;;  %v519_v14 = vmax.f32 %v497_v10, 0.0 }
 0x2cb   :  { %524 = vst.msk [vmem:[#allocation2] sm:$0xff] %vm361_vm5, %v516_v12  ;;  %v517_v15 = vmax.f32 %v489_v13, 0.0 }
 0x2cc   :  { %527 = vst.msk [vmem:[#allocation2 + $0x18] sm:$0xff] %vm361_vm5, %v519_v14 }
 0x2cd   :  { %525 = vst.msk [vmem:[#allocation2 + $0x8] sm:$0xff] %vm361_vm5, %v517_v15  ;;  %v1739_v16 = vpop.f32.mrb[4].mxu1 }
 0x2ce   :  { %v510_v17 = vadd.f32 %v1739_v16, %v1568_v3  ;;  %v501_v18 = vpop.f32.mrb[5].mxu1 }
 0x2cf   :  { %v502_v19 = vadd.f32 %v1568_v3, %v501_v18  ;;  %v1740_v20 = vpop.f32.mrb[6].mxu1 }
 0x2d0   :  { %v522_v21 = vmax.f32 %v510_v17, 0.0  ;;  %v513_v22 = vadd.f32 %v1740_v20, %v1568_v3  ;;  %v504_v23 = vpop.f32.mrb[7].mxu1  ;;  %v1970_v20 = vld [vmem:[%s2531_s7 + $0x18] sm:$0xff]  }
 0x2d1   :  { %v520_v24 = vmax.f32 %v502_v19, 0.0  ;;  %v505_v25 = vadd.f32 %v1568_v3, %v504_v23  ;;  %v1969_v19 = vld [vmem:[%s2531_s7 + $0x8] sm:$0xff]  }
 0x2d2   :  { %530 = vst.msk [vmem:[#allocation2 + $0x30] sm:$0xff] %vm361_vm5, %v522_v21  ;;  %v523_v28 = vmax.f32 %v513_v22, 0.0  ;;  %1758 = vmatpush3.bf16.msra.mxu0 %v1969_v19  ;;  %v1579_v21 = vld [vmem:[%s2530_s6] ss:$0 sm:$0xff] }
 0x2d3   :  { %528 = vst.msk [vmem:[#allocation2 + $0x20] sm:$0xff] %vm361_vm5, %v520_v24  ;;  %v521_v30 = vmax.f32 %v505_v25, 0.0  ;;  %v535_v32 = vld [vmem:[#allocation2 + $0x10] ss:$2 sm:$0xff]  ;;  %v543_v35 = vld [vmem:[#allocation2 + $0x11] ss:$2 sm:$0xff]  ;;  %1769 = vmatprep.subr.bf16.mxu0 %v2035_v58 }
 0x2d4   :  { %532 = vst.msk [vmem:[#allocation2 + $0x38] sm:$0xf] %vm531_vm8, %v523_v28  ;;  %v533_v33 = vld [vmem:[#allocation2] ss:$2 sm:$0xff]  ;;  %v541_v34 = vld [vmem:[#allocation2 + $0x1] ss:$2 sm:$0xff]  ;;  %v549_v38 = vmax.f32 %v535_v32, %v543_v35 }
 0x2d5   :  { %529 = vst.msk [vmem:[#allocation2 + $0x28] sm:$0xff] %vm361_vm5, %v521_v30  ;;  %v548_v37 = vmax.f32 %v533_v33, %v541_v34 }
 0x2d6   :  { %v557_v45 = vrot.slane %v549_v38, 1  ;;  %v576_v50 = vrot.slane %v549_v38, 2 }
 0x2d7   :  { %v556_v44 = vrot.slane %v548_v37, 1  ;;  %v575_v26 = vrot.slane %v548_v37, 2 }
 0x2d9   :  { %v558_v31 = vsel %vm282_vm4, %v556_v44, %v557_v45  ;;  %v577_v61 = vsel %vm197_vm0, %v575_v26, %v576_v50  ;;  %v1973_v44 = vld [vmem:[%s2531_s7 + $0x48] sm:$0xff]  }
 0x2db   :  { %v539_v39 = vld [vmem:[#allocation2 + $0x30] ss:$2 sm:$0x3f]  ;;  %v547_v40 = vld [vmem:[#allocation2 + $0x31] ss:$2 sm:$0x3f] }
 0x2dc   :  { %v537_v41 = vld [vmem:[#allocation2 + $0x20] ss:$2 sm:$0xff]  ;;  %v545_v42 = vld [vmem:[#allocation2 + $0x21] ss:$2 sm:$0xff]  ;;  %v551_v27 = vmax.f32 %v539_v39, %v547_v40  ;;  %v1972_v39 = vld [vmem:[%s2531_s7 + $0x38] sm:$0xff]  }
 0x2dd   :  { %v550_v43 = vmax.f32 %v537_v41, %v545_v42 }
 0x2de   :  { %v561_v46 = vrot.slane %v551_v27, 1  ;;  %v580_v49 = vrot.slane %v551_v27, 2 }
 0x2df   :  { %v559_v47 = vrot.slane %v550_v43, 1  ;;  %v578_v48 = vrot.slane %v550_v43, 2 }
 0x2e1   :  { %v562_v53 = vsel %vm282_vm4, %v559_v47, %v561_v46  ;;  %v560_v54 = vsel %vm282_vm4, %v557_v45, %v559_v47  ;;  %v581_v59 = vsel %vm197_vm0, %v578_v48, %v580_v49  ;;  %v579_v60 = vsel %vm197_vm0, %v576_v50, %v578_v48  ;;  %v1974_v45 = vld [vmem:[%s2531_s7 + $0x58] sm:$0xff]   ;;  %v1975_v50 = vld [vmem:[%s2531_s7] sm:$0xff]  }
 0x2e2   :  { %v1941_v55 = vpack.i.bf16 %v561_v46, %v562_v53  ;;  %v1936_v56 = vpack.i.bf16 %v560_v54, %v558_v31  ;;  %v1951_v52 = vpack.i.bf16 %v580_v49, %v581_v59  ;;  %v1946_v62 = vpack.i.bf16 %v579_v60, %v577_v61  ;;  %v1976_v53 = vld [vmem:[%s2531_s7 + $0x10] sm:$0xff]  }
 0x2e3   :  { %v1978_v59 = vld [vmem:[%s2531_s7 + $0x30] sm:$0xff]  }
 0x2e4   :  { %1942 = vrot.lane.b32.xlu1 %v1941_v55, %s2033_s21  ;;  %1937 = vrot.lane.b32.xlu0 %v1936_v56, %s2033_s21  ;;  %v1977_v56 = vld [vmem:[%s2531_s7 + $0x20] sm:$0xff]  }
 0x2e8   :  { %1952 = vrot.lane.b32.xlu1 %v1951_v52, %s2034_s3  ;;  %1947 = vrot.lane.b32.xlu0 %v1946_v62, %s2034_s3 }
 0x356   :  { %v1943_v63 = vpop.permute.xlu1 %1942  ;;  %v1938_v0 = vpop.permute.xlu0 %1937 }
 0x357   :  { %v1945_v1 = vunpack.i.h.bf16 %v1943_v63  ;;  %v1944_v2 = vunpack.i.l.bf16 %v1943_v63  ;;  %v1940_v51 = vunpack.i.h.bf16 %v1938_v0  ;;  %v1939_v57 = vunpack.i.l.bf16 %v1938_v0  ;;  %v1979_v63 = vld [vmem:[%s2531_s7 + $0x40] sm:$0xff]   ;;  %v1980_v0 = vld [vmem:[%s2531_s7 + $0x50] sm:$0xff]  }
 0x359   :  { %v597_v9 = vsel %vm361_vm5, %v551_v27, %v1945_v1  ;;  %v596_v10 = vsel %vm361_vm5, %v550_v43, %v1944_v2  ;;  %v595_v11 = vsel %vm361_vm5, %v549_v38, %v1940_v51  ;;  %v594_v12 = vsel %vm361_vm5, %v548_v37, %v1939_v57  ;;  %v1971_v38 = vld [vmem:[%s2531_s7 + $0x28] sm:$0xff]  }
 0x35a   :  { %v1953_v3 = vpop.permute.xlu1 %1952  ;;  %v1948_v4 = vpop.permute.xlu0 %1947 }
 0x35b   :  { %v1955_v5 = vunpack.i.h.bf16 %v1953_v3  ;;  %v1954_v6 = vunpack.i.l.bf16 %v1953_v3  ;;  %v1950_v7 = vunpack.i.h.bf16 %v1948_v4  ;;  %v1949_v8 = vunpack.i.l.bf16 %v1948_v4 }
 0x35d   :  { %v600_v13 = vsel %vm370_vm6, %v596_v10, %v1954_v6  ;;  %v601_v14 = vsel %vm370_vm6, %v597_v9, %v1955_v5  ;;  %v598_v15 = vsel %vm370_vm6, %v594_v12, %v1949_v8  ;;  %v599_v16 = vsel %vm370_vm6, %v595_v11, %v1950_v7  ;;  %v1981_v5 = vld [vmem:[%s2533_s9] sm:$0xff]   ;;  %v1982_v6 = vld [vmem:[%s2533_s9 + $0x8] sm:$0xff]   ;;  %v1983_v7 = vld [vmem:[%s2533_s9 + $0x10] sm:$0xff]  }
 0x35e   :  { %v603_v17 = vpack.c.bf16 %v601_v14, %v600_v13  ;;  %v602_v18 = vpack.c.bf16 %v599_v16, %v598_v15  ;;  %v1984_v8 = vld [vmem:[%s2533_s9 + $0x18] sm:$0xff]   ;;  %v1985_v9 = vld [vmem:[%s2533_s9 + $0x20] sm:$0xff]   ;;  %v1986_v10 = vld [vmem:[%s2533_s9 + $0x28] sm:$0xff]  }
 0x35f   :  { %v1987_v11 = vld [vmem:[%s2533_s9 + $0x30] ss:$0 sps:$4 sm:$0x33]  }
 0x360   :  { %1753 = vmatprep.mubr.msk.bf16.mxu1 %vm438_vm7, %v602_v18  ;;  %v1461_v12 = vsel %vm1459_vm12, %v1987_v11, 0  ;;  %v1644_v11 = vld [vmem:[%s2524_s0 + $0x1c] ss:$32 sm:$0x1] }
 0x361   :  { %1754 = vmatmul.mubr.msk.bf16.vlgmr.msra.gmra.mrb[8].mxu1 %vm438_vm7, %v603_v17 }
 0x362   :  { %1765 = vmatprep.mubr.msk.bf16.mxu1 %vm2036_vm9, %v2035_v58  ;;  %1764 = vmatpush3.bf16.msra.mxu1 %v1970_v20 }
 0x363   :  { %1775 = vmatprep.subr.bf16.mxu1 %v2035_v58 }
 0x434   :  { %v1755_v22 = vpop.f32.mrb[8].mxu1 }
 0x435   :  { %v708_v23 = vadd.f32 %v1755_v22, %v1579_v21  ;;  %v699_v24 = vpop.f32.mrb[9].mxu1 }
 0x436   :  { %v700_v25 = vadd.f32 %v1579_v21, %v699_v24  ;;  %v1756_v28 = vpop.f32.mrb[10].mxu1 }
 0x437   :  { %v716_v30 = vmax.f32 %v708_v23, 0.0  ;;  %v711_v32 = vadd.f32 %v1756_v28, %v1579_v21  ;;  %v702_v33 = vpop.f32.mrb[11].mxu1 }
 0x438   :  { %v714_v34 = vmax.f32 %v700_v25, 0.0  ;;  %v703_v35 = vadd.f32 %v1579_v21, %v702_v33 }
 0x439   :  { %721 = vst.msk [vmem:[#allocation3 + $0x10] sm:$0xff] %vm718_vm10, %v716_v30  ;;  %v717_v36 = vmax.f32 %v711_v32, 0.0 }
 0x43a   :  { %719 = vst.msk [vmem:[#allocation3] sm:$0xff] %vm718_vm10, %v714_v34  ;;  %v715_v37 = vmax.f32 %v703_v35, 0.0 }
 0x43b   :  { %723 = vst.msk [vmem:[#allocation3 + $0x18] sm:$0xf] %vm722_vm11, %v717_v36 }
 0x43c   :  { %720 = vst.msk [vmem:[#allocation3 + $0x8] sm:$0xff] %vm718_vm10, %v715_v37 }
 0x441   :  { %v729_v40 = vld [vmem:[#allocation3 + $0x1] ss:$16 sm:$0x3]  ;;  %v790_v41 = vld [vmem:[#allocation3 + $0x3] ss:$16 sm:$0x3] }
 0x442   :  { %v730_v42 = vpack.c.bf16 %v729_v40, %v729_v40  ;;  %v791_v27 = vpack.c.bf16 %v790_v41, %v790_v41  ;;  %v851_v29 = vld [vmem:[#allocation3 + $0x5] ss:$16 sm:$0x3]  ;;  %v912_v43 = vld [vmem:[#allocation3 + $0x7] ss:$16 sm:$0x3] }
 0x443   :  { %v852_v46 = vpack.c.bf16 %v851_v29, %v851_v29  ;;  %v913_v47 = vpack.c.bf16 %v912_v43, %v912_v43  ;;  %v973_v48 = vld [vmem:[#allocation3 + $0x9] ss:$16 sm:$0x3]  ;;  %v1034_v49 = vld [vmem:[#allocation3 + $0xb] ss:$16 sm:$0x3] }
 0x444   :  { %1760 = vmatmul.mubr.msk.bf16.vlgmr.msra.gmra.mrb[8].mxu0 %vm718_vm10, %v730_v42  ;;  %1766 = vmatmul.mubr.msk.bf16.vlgmr.msra.gmra.mrb[12].mxu1 %vm718_vm10, %v791_v27  ;;  %v974_v31 = vpack.c.bf16 %v973_v48, %v973_v48  ;;  %v1035_v54 = vpack.c.bf16 %v1034_v49, %v1034_v49  ;;  %v724_v26 = vld [vmem:[#allocation3] ss:$16 sm:$0x3]  ;;  %v784_v55 = vld [vmem:[#allocation3 + $0x2] ss:$16 sm:$0x3] }
 0x445   :  { %1770 = vmatpush3.bf16.msra.mxu0 %v1971_v38  ;;  %1776 = vmatpush3.bf16.msra.mxu1 %v1972_v39  ;;  %v725_v60 = vpack.c.bf16 %v724_v26, %v724_v26  ;;  %v785_v61 = vpack.c.bf16 %v784_v55, %v784_v55  ;;  %v845_v52 = vld [vmem:[#allocation3 + $0x4] ss:$16 sm:$0x3]  ;;  %v906_v62 = vld [vmem:[#allocation3 + $0x6] ss:$16 sm:$0x3] }
 0x446   :  { %1771 = vmatprep.mubr.msk.bf16.mxu0 %vm2036_vm9, %v2035_v58  ;;  %1777 = vmatprep.mubr.msk.bf16.mxu1 %vm2036_vm9, %v2035_v58  ;;  %v846_v1 = vpack.c.bf16 %v845_v52, %v845_v52  ;;  %v907_v2 = vpack.c.bf16 %v906_v62, %v906_v62  ;;  %v967_v51 = vld [vmem:[#allocation3 + $0x8] ss:$16 sm:$0x3]  ;;  %v1028_v57 = vld [vmem:[#allocation3 + $0xa] ss:$16 sm:$0x3] }
 0x447   :  { %1781 = vmatprep.subr.bf16.mxu0 %v2035_v58  ;;  %1787 = vmatprep.subr.bf16.mxu1 %v2035_v58  ;;  %v968_v3 = vpack.c.bf16 %v967_v51, %v967_v51  ;;  %v1029_v4 = vpack.c.bf16 %v1028_v57, %v1028_v57 }
 0x44c   :  { %1772 = vmatmul.mubr.msk.bf16.vlgmr.msra.gmra.mrb[12].mxu0 %vm718_vm10, %v852_v46  ;;  %1778 = vmatmul.mubr.msk.bf16.vlgmr.msra.gmra.mrb[16].mxu1 %vm718_vm10, %v913_v47 }
 0x44d   :  { %1782 = vmatpush3.bf16.msra.mxu0 %v1973_v44  ;;  %1788 = vmatpush3.bf16.msra.mxu1 %v1974_v45 }
 0x44e   :  { %1783 = vmatprep.mubr.msk.bf16.mxu0 %vm2036_vm9, %v2035_v58  ;;  %1789 = vmatprep.mubr.msk.bf16.mxu1 %vm2036_vm9, %v2035_v58 }
 0x44f   :  { %1793 = vmatprep.subr.bf16.mxu0 %v2035_v58  ;;  %1799 = vmatprep.subr.bf16.mxu1 %v2035_v58 }
 0x454   :  { %1784 = vmatmul.mubr.msk.bf16.vlgmr.msra.gmra.mrb[16].mxu0 %vm718_vm10, %v974_v31  ;;  %1790 = vmatmul.mubr.msk.bf16.vlgmr.msra.gmra.mrb[20].mxu1 %vm718_vm10, %v1035_v54 }
 0x455   :  { %1794 = vmatpush3.bf16.msra.mxu0 %v1975_v50  ;;  %1800 = vmatpush3.bf16.msra.mxu1 %v1976_v53 }
 0x456   :  { %1795 = vmatprep.mubr.msk.bf16.mxu0 %vm2036_vm9, %v2035_v58  ;;  %1801 = vmatprep.mubr.msk.bf16.mxu1 %vm2036_vm9, %v2035_v58 }
 0x457   :  { %1805 = vmatprep.subr.bf16.mxu0 %v2035_v58  ;;  %1811 = vmatprep.subr.bf16.mxu1 %v2035_v58 }
 0x45c   :  { %1796 = vmatmul.mubr.msk.bf16.vlgmr.msra.gmra.mrb[20].mxu0 %vm718_vm10, %v725_v60  ;;  %1802 = vmatmul.mubr.msk.bf16.vlgmr.msra.gmra.mrb[24].mxu1 %vm718_vm10, %v785_v61 }
 0x45d   :  { %1806 = vmatpush3.bf16.msra.mxu0 %v1977_v56  ;;  %1812 = vmatpush3.bf16.msra.mxu1 %v1978_v59 }
 0x45e   :  { %1807 = vmatprep.mubr.msk.bf16.mxu0 %vm2036_vm9, %v2035_v58  ;;  %1813 = vmatprep.mubr.msk.bf16.mxu1 %vm2036_vm9, %v2035_v58 }
 0x45f   :  { %1817 = vmatprep.subr.bf16.mxu0 %v2035_v58  ;;  %1823 = vmatprep.subr.bf16.mxu1 %v2035_v58 }
 0x464   :  { %1808 = vmatmul.mubr.msk.bf16.vlgmr.msra.gmra.mrb[24].mxu0 %vm718_vm10, %v846_v1  ;;  %1814 = vmatmul.mubr.msk.bf16.vlgmr.msra.gmra.mrb[28].mxu1 %vm718_vm10, %v907_v2 }
 0x465   :  { %1818 = vmatpush3.bf16.msra.mxu0 %v1979_v63  ;;  %1824 = vmatpush3.bf16.msra.mxu1 %v1980_v0 }
 0x466   :  { %1819 = vmatprep.mubr.msk.bf16.mxu0 %vm2036_vm9, %v2035_v58  ;;  %1825 = vmatprep.mubr.msk.bf16.mxu1 %vm2036_vm9, %v2035_v58 }
 0x467   :  { %1829 = vmatprep.subr.bf16.mxu0 %v2035_v58 }
 0x46c   :  { %1820 = vmatmul.mubr.msk.bf16.vlgmr.msra.gmra.mrb[28].mxu0 %vm718_vm10, %v968_v3  ;;  %1826 = vmatmul.mubr.msk.bf16.vlgmr.msra.gmra.mrb[32].mxu1 %vm718_vm10, %v1029_v4 }
 0x46d   :  { %1843 = vmatprep.mubr.msk.bf16.mxu0 %vm2036_vm9, %v2035_v58  ;;  %1830 = vmatpush3.bf16.msra.mxu0 %v1981_v5 }
 0x46e   :  { %1831 = vmatprep.subr.bf16.mxu0 %v2035_v58 }
 0x471   :  { %1832 = vmatpush3.bf16.msra.mxu0 %v1982_v6 }
 0x472   :  { %1833 = vmatprep.subr.bf16.mxu0 %v2035_v58 }
 0x475   :  { %1834 = vmatpush3.bf16.msra.mxu0 %v1983_v7  ;;  %v1634_v7 = vld [vmem:[%s2532_s8] ss:$0 sm:$0xff] }
 0x476   :  { %1835 = vmatprep.subr.bf16.mxu0 %v2035_v58 }
 0x479   :  { %1836 = vmatpush3.bf16.msra.mxu0 %v1984_v8 }
 0x47a   :  { %1837 = vmatprep.subr.bf16.mxu0 %v2035_v58 }
 0x47d   :  { %1838 = vmatpush3.bf16.msra.mxu0 %v1985_v9 }
 0x47e   :  { %1839 = vmatprep.subr.bf16.mxu0 %v2035_v58 }
 0x481   :  { %1840 = vmatpush3.bf16.msra.mxu0 %v1986_v10 }
 0x482   :  { %1841 = vmatprep.subr.bf16.mxu0 %v2035_v58 }
 0x485   :  { %1842 = vmatpush3.bf16.msra.mxu0 %v1461_v12  ;;  %v1645_v12 = vld [vmem:[%s2524_s0 + $0x1c] ss:$32 sm:$0x2] }
 0x517   :  { %v777_v13 = vpop.f32.mrb[8].mxu0  ;;  %v838_v14 = vpop.f32.mrb[12].mxu1 }
 0x518   :  { %v1761_v15 = vpop.f32.mrb[9].mxu0  ;;  %v1767_v16 = vpop.f32.mrb[13].mxu1 }
 0x519   :  { %v780_v17 = vpop.f32.mrb[10].mxu0  ;;  %v841_v18 = vpop.f32.mrb[14].mxu1  ;;  %v1506_v15 = vor.u32 %v1645_v12, %v1644_v11 }
 0x51a   :  { %v1762_v19 = vpop.f32.mrb[11].mxu0  ;;  %v1768_v20 = vpop.f32.mrb[15].mxu1  ;;  %v1649_v17 = vld [vmem:[%s2524_s0 + $0x1e] ss:$32 sm:$0x1]  ;;  %v1508_v18 = vstv %s1507_s30 }
 0x51b   :  { %v1516_v19 = vstv %s1648_s14  ;;  %v1650_v20 = vld [vmem:[%s2524_s0 + $0x1e] ss:$32 sm:$0x2] }
 0x51f   :  { %v899_v21 = vpop.f32.mrb[12].mxu0  ;;  %v960_v22 = vpop.f32.mrb[16].mxu1 }
 0x520   :  { %v1773_v23 = vpop.f32.mrb[13].mxu0  ;;  %v1779_v24 = vpop.f32.mrb[17].mxu1 }
 0x521   :  { %v902_v58 = vpop.f32.mrb[14].mxu0  ;;  %v963_v25 = vpop.f32.mrb[18].mxu1  ;;  %v1522_v23 = vor.u32 %v1650_v20, %v1649_v17  ;;  %v1524_v24 = vstv %s1651_s1 }
 0x522   :  { %v1774_v28 = vpop.f32.mrb[15].mxu0  ;;  %v1780_v30 = vpop.f32.mrb[19].mxu1  ;;  %v1652_v58 = vld [vmem:[%s2524_s0 + $0x1f] ss:$32 sm:$0x1] }
 0x523   :  { %v1653_v25 = vld [vmem:[%s2524_s0 + $0x1f] ss:$32 sm:$0x2]  ;;  %v1525_v30 = vmul.f32 %v1524_v24, %v1522_v23 }
 0x527   :  { %v1021_v32 = vpop.f32.mrb[16].mxu0  ;;  %v1082_v33 = vpop.f32.mrb[20].mxu1 }
 0x528   :  { %v1785_v34 = vpop.f32.mrb[17].mxu0  ;;  %v1791_v35 = vpop.f32.mrb[21].mxu1 }
 0x529   :  { %v1024_v36 = vpop.f32.mrb[18].mxu0  ;;  %v1085_v37 = vpop.f32.mrb[22].mxu1 }
 0x52a   :  { %v1786_v38 = vpop.f32.mrb[19].mxu0  ;;  %v1792_v39 = vpop.f32.mrb[23].mxu1  ;;  %v1635_v36 = vld [vmem:[%s2534_s10] ss:$0 sm:$0xff] }
 0x52f   :  { %v1131_v40 = vpop.f32.mrb[20].mxu0  ;;  %v1180_v41 = vpop.f32.mrb[24].mxu1 }
 0x530   :  { %v1132_v42 = vadd.f32 %v1131_v40, %v777_v13  ;;  %v1181_v27 = vadd.f32 %v1180_v41, %v838_v14  ;;  %v1797_v29 = vpop.f32.mrb[21].mxu0  ;;  %v1803_v43 = vpop.f32.mrb[25].mxu1  ;;  %v1646_v13 = vld [vmem:[%s2524_s0 + $0x1d] ss:$32 sm:$0x1]  ;;  %v1537_v41 = vstv %s2536_s12 }
 0x531   :  { %v1134_v44 = vpop.f32.mrb[22].mxu0  ;;  %v1183_v45 = vpop.f32.mrb[26].mxu1  ;;  %v1647_v14 = vld [vmem:[%s2524_s0 + $0x1d] ss:$32 sm:$0x2]  ;;  %s2037_s0 = smov [#allocation8]  }
 0x532   :  { %v1382_v46 = vadd.f32 %v1181_v27, %v1132_v42  ;;  %v1798_v47 = vpop.f32.mrb[23].mxu0  ;;  %v1804_v48 = vpop.f32.mrb[27].mxu1  ;;  %v1514_v16 = vor.u32 %v1647_v14, %v1646_v13  ;;  %s1553_s26 = sshll.u32 %s2037_s0, 4  ;;  %s1554_s26 = int_to_ptr.vmem [resolvable:$true] %s1553_s26 }
 0x533   :  { %s2004_s10 = scalar_lea.vmem %s1554_s26, 32  ;;  %p2009_p6 = scmp.lt.s32.totalorder %s1554_s26, %s1554_s26 }
 0x534   :  { %p2005_p5 = scmp.ne.s32.totalorder %s1554_s26, %s2004_s10  ;;  %p2010_p7 = scmp.lt.s32.totalorder %s2004_s10, %s2004_s10 }
 0x536   :  { %p2011_p8 = por %p2010_p7, %p2009_p6 }
 0x537   :  { %v1229_v49 = vpop.f32.mrb[24].mxu0  ;;  %v1278_v50 = vpop.f32.mrb[28].mxu1 }
 0x538   :  { %v1230_v53 = vadd.f32 %v1229_v49, %v899_v21  ;;  %v1279_v31 = vadd.f32 %v1278_v50, %v960_v22  ;;  %v1809_v54 = vpop.f32.mrb[25].mxu0  ;;  %v1815_v26 = vpop.f32.mrb[29].mxu1  ;;  %v1509_v21 = vmul.f32 %v1508_v18, %v1506_v15  ;;  %v1517_v22 = vmul.f32 %v1516_v19, %v1514_v16  ;;  %p2012_p9 = pnand %p2011_p8, %p2005_p5 }
 0x539   :  { %v1232_v55 = vpop.f32.mrb[26].mxu0  ;;  %v1281_v56 = vpop.f32.mrb[30].mxu1 }
 0x53a   :  { %v1383_v59 = vadd.f32 %v1279_v31, %v1230_v53  ;;  %v1810_v60 = vpop.f32.mrb[27].mxu0  ;;  %v1816_v61 = vpop.f32.mrb[31].mxu1  ;;  %v1518_v28 = vadd.f32 %v1517_v22, %v1509_v21 }
 0x53c   :  { %v1385_v52 = vadd.f32 %v1383_v59, %v1382_v46  ;;  %v1526_v34 = vadd.f32 %v1525_v30, %v1518_v28 }
 0x53f   :  { %v1327_v62 = vpop.f32.mrb[28].mxu0  ;;  %v1376_v63 = vpop.f32.mrb[32].mxu1 }
 0x540   :  { %v1328_v0 = vadd.f32 %v1327_v62, %v1021_v32  ;;  %v1377_v1 = vadd.f32 %v1376_v63, %v1082_v33  ;;  %v1821_v2 = vpop.f32.mrb[29].mxu0  ;;  %v1827_v51 = vpop.f32.mrb[33].mxu1  ;;  %v1530_v32 = vor.u32 %v1653_v25, %v1652_v58  ;;  %v1532_v33 = vstv %s1654_s19 }
 0x541   :  { %v1330_v57 = vpop.f32.mrb[30].mxu0  ;;  %v1379_v3 = vpop.f32.mrb[34].mxu1 }
 0x542   :  { %v1384_v4 = vadd.f32 %v1377_v1, %v1328_v0  ;;  %v1822_v5 = vpop.f32.mrb[31].mxu0  ;;  %v1828_v6 = vpop.f32.mrb[35].mxu1  ;;  %v1533_v35 = vmul.f32 %v1532_v33, %v1530_v32 }
 0x544   :  { %v1386_v8 = vadd.f32 %v1385_v52, %v1384_v4  ;;  %v1534_v37 = vadd.f32 %v1533_v35, %v1526_v34 }
 0x546   :  { %v1394_v9 = vadd.f32 %v1634_v7, %v1386_v8 }
 0x548   :  { %v1395_v10 = vpack.c.bf16 %v1394_v9, %v1394_v9 }
 0x54a   :  { %1844 = vmatmul.mubr.msk.bf16.vlgmr.msra.gmra.mrb[32].mxu0 %vm1455_vm13, %v1395_v10 }
 0x61d   :  { %v1497_v38 = vpop.f32.mrb[32].mxu0 }
 0x61e   :  { %v1498_v39 = vadd.f32 %v1635_v36, %v1497_v38  ;;  %v1845_v40 = vpop.f32.mrb[33].mxu0 }
 0x61f   :  { %v1500_v42 = vpop.f32.mrb[34].mxu0 }
 0x620   :  { %v1535_v27 = vadd.f32 %v1534_v37, %v1498_v39  ;;  %v1846_v29 = vpop.f32.mrb[35].mxu0 }
 0x622   :  { %v1538_v43 = vadd.f32 %v1537_v41, %v1535_v27 }
 0x624   :  { %v1655_v44 = vmul.f32 -1.442695, %v1538_v43 }
 0x626   :  { %1988 = vpow2.f32 %v1655_v44 }
 0x630   :  { %v1989_v45 = vpop.eup %1988 }
 0x631   :  { %v1542_v46 = vadd.f32 1.0, %v1989_v45 }
 0x633   :  { %1990 = vrcp.f32 %v1542_v46 }
 0x63d   :  { %v1991_v47 = vpop.eup %1990 }
 0x63e   :  { %1546 = vst.msk [vmem:[#allocation8] sm:$0x3] %vm1545_vm14, %v1991_v47 }
 0x63f   :  { %2015 = shalt.err (!%p2012_p9)
}
 0x640   :  { %s2016_s27 = scalar_lea.hbm %s2537_s13, 32 }
 0x641   :  { %p2017_p10 = scmp.ne.s32.totalorder %s2537_s13, %s2016_s27  ;;  %p2020_p11 = scmp.lt.u32.totalorder %s2016_s27, %s2537_s13 }
 0x643   :  { %p2022_p12 = pnand %p2020_p11, %p2017_p10 }
 0x645   :  { %2025 = shalt.err (!%p2022_p12)
}
 0x646   :  { %1556 = dma.vmem_to_hbm [thread:$0]  %s1554_s26, 32, %s2537_s13, [#allocation6]  }
 0x647   :  { %2028 = dma.done.wait [#allocation6], 32  }
 0x648   :  { %2029 = vsyncadd [#allocation6], 4294967264 }
 0x649   :  { %1560 = vsyncpa [#allocation6], 1 }
 0x64a   :  { %1561 = vsyncpa [#allocation7], 1 }

</bundles_post_ra>
